<compile_context>
chip_gen: v5e
topology: v5e:2x2
jax: 0.10.0
libtpu: 0.0.40
codegen_flags: <defaults>
</compile_context>

<pallas_src>
import functools

import jax
import jax.numpy as jnp
from jax.experimental import pallas as pl
from jax.experimental.pallas import tpu as pltpu


def _mha_head_kernel(x_ref, wq_ref, wk_ref, wv_ref, wo_ref,
                     bq_ref, bk_ref, bv_ref, bo_ref,
                     o_ref, acc_ref, *, head_dim):
    """One grid step = one (batch, head) pair."""
    h = pl.program_id(1)
    num_heads = pl.num_programs(1)

    @pl.when(h == 0)
    def _():
        acc_ref[...] = jnp.zeros_like(acc_ref)

    x = x_ref[0]                                            # (S, D) bf16

    # Per-head projections: bf16 x bf16 -> f32 MXU accumulate, f32 bias add.
    q = jnp.dot(x, wq_ref[...], preferred_element_type=jnp.float32) + bq_ref[...]
    k = jnp.dot(x, wk_ref[...], preferred_element_type=jnp.float32) + bk_ref[...]
    v = jnp.dot(x, wv_ref[...], preferred_element_type=jnp.float32) + bv_ref[...]

    # Fold the softmax scale into q (S*dh mults instead of S*S).
    q = q * (1.0 / (head_dim ** 0.5))

    # Scores: contract the last dim of both operands directly (no k.T / XLU).
    s = jax.lax.dot_general(
        q.astype(jnp.bfloat16), k.astype(jnp.bfloat16),
        dimension_numbers=(((1,), (1,)), ((), ())),
        preferred_element_type=jnp.float32)                 # (S, S) f32

    # Numerically stable softmax numerator in f32 (VPU/EUP).
    m = jnp.max(s, axis=-1, keepdims=True)
    e = jnp.exp(s - m)                                      # (S, S)
    l = jnp.sum(e, axis=-1, keepdims=True)                  # (S, 1)

    # Unnormalized PV matmul (bf16 -> MXU), then normalize the small (S, dh)
    # result with an approx (EUP) reciprocal instead of scaling (S, S) probs.
    ctx = jnp.dot(e.astype(jnp.bfloat16), v.astype(jnp.bfloat16),
                  preferred_element_type=jnp.float32)       # (S, dh)
    ctx = ctx * pl.reciprocal(l, approx=True)

    # This head's contribution through its row-slice of Wo; accumulate in VMEM.
    acc_ref[...] += jnp.dot(ctx.astype(jnp.bfloat16), wo_ref[...],
                            preferred_element_type=jnp.float32)  # (S, D)

    @pl.when(h == num_heads - 1)
    def _():
        o_ref[0] = (acc_ref[...] + bo_ref[...]).astype(o_ref.dtype)


def multi_head_attention_pallas(x, params, *, num_heads):
    """x: (B, S, D) float32. Returns (B, S, D) float32."""
    B, S, D = x.shape
    head_dim = D // num_heads
    wq, wk, wv, wo, bq, bk, bv, bo = params

    x_bf16 = x.astype(jnp.bfloat16)

    kernel = functools.partial(_mha_head_kernel, head_dim=head_dim)

    x_spec    = pl.BlockSpec((1, S, D), lambda b, h: (b, 0, 0))
    wqkv_spec = pl.BlockSpec((D, head_dim), lambda b, h: (0, h))   # column slice
    wo_spec   = pl.BlockSpec((head_dim, D), lambda b, h: (h, 0))   # row slice
    bqkv_spec = pl.BlockSpec((1, head_dim), lambda b, h: (0, h))
    bo_spec   = pl.BlockSpec((1, D), lambda b, h: (0, 0))
    out_spec  = pl.BlockSpec((1, S, D), lambda b, h: (b, 0, 0))

    flops = 8 * B * S * D * D + 4 * B * num_heads * S * S * head_dim
    bytes_accessed = (
        B * S * D * 2                                 # activations in (bf16)
        + 4 * D * D * 2 + 3 * D * 4 + D * 4           # weights (bf16) + biases (f32)
        + B * S * D * 4                               # output (f32)
    )

    return pl.pallas_call(
        kernel,
        out_shape=jax.ShapeDtypeStruct((B, S, D), jnp.float32),
        grid_spec=pltpu.PrefetchScalarGridSpec(
            num_scalar_prefetch=0,
            grid=(B, num_heads),
            in_specs=[
                x_spec,
                wqkv_spec, wqkv_spec, wqkv_spec, wo_spec,   # wq, wk, wv, wo
                bqkv_spec, bqkv_spec, bqkv_spec, bo_spec,   # bq, bk, bv, bo
            ],
            out_specs=out_spec,
            scratch_shapes=[pltpu.VMEM((S, D), jnp.float32)],
        ),
        compiler_params=pltpu.CompilerParams(
            dimension_semantics=("parallel", "arbitrary"),
            vmem_limit_bytes=32 * 1024 * 1024,
        ),
        cost_estimate=pl.CostEstimate(
            flops=flops,
            transcendentals=B * num_heads * S * S,
            bytes_accessed=bytes_accessed,
        ),
    )(x_bf16, wq, wk, wv, wo, bq, bk, bv, bo)


class MultiHeadSelfAttention:
    """The wrapped `attn` module. Returns a tuple, like PyTorch attention blocks."""

    def __init__(self, hidden, num_heads, key):
        self.hidden = hidden
        self.num_heads = num_heads
        keys = jax.random.split(key, 8)
        scale = 1.0 / (hidden ** 0.5)
        # Weights stored in bf16 (fed straight to the MXU); biases in f32.
        self.wq = (jax.random.normal(keys[0], (hidden, hidden), jnp.float32) * scale).astype(jnp.bfloat16)
        self.wk = (jax.random.normal(keys[1], (hidden, hidden), jnp.float32) * scale).astype(jnp.bfloat16)
        self.wv = (jax.random.normal(keys[2], (hidden, hidden), jnp.float32) * scale).astype(jnp.bfloat16)
        self.wo = (jax.random.normal(keys[3], (hidden, hidden), jnp.float32) * scale).astype(jnp.bfloat16)
        self.bq = jax.random.normal(keys[4], (1, hidden), jnp.float32) * 0.01
        self.bk = jax.random.normal(keys[5], (1, hidden), jnp.float32) * 0.01
        self.bv = jax.random.normal(keys[6], (1, hidden), jnp.float32) * 0.01
        self.bo = jax.random.normal(keys[7], (1, hidden), jnp.float32) * 0.01

    def params(self):
        return (self.wq, self.wk, self.wv, self.wo,
                self.bq, self.bk, self.bv, self.bo)

    def __call__(self, x):
        out = multi_head_attention_pallas(x, self.params(), num_heads=self.num_heads)
        return (out,)   # tuple, mirroring typical PyTorch attention modules


class AttnWrapper:
    """Faithful port of the PyTorch AttnWrapper forward semantics."""

    def __init__(self, attn):
        self.attn = attn
        self.activations = None

    def __call__(self, *args, **kwargs):
        output = self.attn(*args, **kwargs)
        self.activations = output[0]
        return output


def _reference_mha(x, params, num_heads):
    """Pure-JAX f32 reference for correctness checking (uses the same bf16
    parameter values / bf16-rounded activations, math done in f32)."""
    wq, wk, wv, wo, bq, bk, bv, bo = params
    wq, wk, wv, wo = (w.astype(jnp.float32) for w in (wq, wk, wv, wo))
    x = x.astype(jnp.bfloat16).astype(jnp.float32)
    B, S, D = x.shape
    dh = D // num_heads
    q = x @ wq + bq
    k = x @ wk + bk
    v = x @ wv + bv
    q = q.reshape(B, S, num_heads, dh).transpose(0, 2, 1, 3)
    k = k.reshape(B, S, num_heads, dh).transpose(0, 2, 1, 3)
    v = v.reshape(B, S, num_heads, dh).transpose(0, 2, 1, 3)
    s = jnp.einsum("bhqd,bhkd->bhqk", q, k) / (dh ** 0.5)
    p = jax.nn.softmax(s, axis=-1)
    ctx = jnp.einsum("bhqk,bhkd->bhqd", p, v)
    ctx = ctx.transpose(0, 2, 1, 3).reshape(B, S, D)
    return ctx @ wo + bo


if __name__ == "__main__":
    # Small but TPU-tile-aligned shapes: head_dim = 256 / 2 = 128.
    B, S, D, H = 2, 128, 256, 2

    key = jax.random.PRNGKey(0)
    k_x, k_p = jax.random.split(key)
    x = jax.random.normal(k_x, (B, S, D), jnp.float32)

    attn = MultiHeadSelfAttention(D, H, k_p)
    wrapper = AttnWrapper(attn)

    output = wrapper(x)
    out = jax.block_until_ready(output[0])
    acts = jax.block_until_ready(wrapper.activations)

    ref = _reference_mha(x, attn.params(), H)
    assert out.shape == (B, S, D)
    assert acts.shape == (B, S, D)
    assert jnp.allclose(out, ref, atol=3e-2, rtol=3e-2), "mismatch vs reference"
    assert jnp.array_equal(acts, out), "activations cache mismatch"

    print("KERNEL_OK")
</pallas_src>

<mosaic_0001>
module attributes {stable_mosaic.version = 11 : i64} {
  func.func @_mha_head_kernel(%arg0: i32, %arg1: i32, %arg2: memref<1x128x256xbf16, #tpu.memory_space<vmem>>, %arg3: memref<256x128xbf16, #tpu.memory_space<vmem>>, %arg4: memref<256x128xbf16, #tpu.memory_space<vmem>>, %arg5: memref<256x128xbf16, #tpu.memory_space<vmem>>, %arg6: memref<128x256xbf16, #tpu.memory_space<vmem>>, %arg7: memref<1x128xf32, #tpu.memory_space<vmem>>, %arg8: memref<1x128xf32, #tpu.memory_space<vmem>>, %arg9: memref<1x128xf32, #tpu.memory_space<vmem>>, %arg10: memref<1x256xf32, #tpu.memory_space<vmem>>, %arg11: memref<1x128x256xf32, #tpu.memory_space<vmem>>, %arg12: memref<128x256xf32, #tpu.memory_space<vmem>>) attributes {dimension_semantics = [#tpu.dimension_semantics<parallel>, #tpu.dimension_semantics<arbitrary>], iteration_bounds = array<i64: 2, 2>, scalar_prefetch = 0 : i64, scratch_operands = 1 : i64, tpu.core_type = #tpu.core_type<tc>, window_params = [{transform_indices = @transform_0, window_bounds = array<i64: 1, 128, 256>}, {transform_indices = @transform_1, window_bounds = array<i64: 256, 128>}, {transform_indices = @transform_2, window_bounds = array<i64: 256, 128>}, {transform_indices = @transform_3, window_bounds = array<i64: 256, 128>}, {transform_indices = @transform_4, window_bounds = array<i64: 128, 256>}, {transform_indices = @transform_5, window_bounds = array<i64: 1, 128>}, {transform_indices = @transform_6, window_bounds = array<i64: 1, 128>}, {transform_indices = @transform_7, window_bounds = array<i64: 1, 128>}, {pipeline_mode = #tpu.pipeline_mode<synchronous>, transform_indices = @transform_8, window_bounds = array<i64: 1, 256>}, {transform_indices = @transform_9, window_bounds = array<i64: 1, 128, 256>}]} {
    %c0_i32 = arith.constant 0 : i32
    %0 = arith.cmpi eq, %arg1, %c0_i32 : i32
    %1 = arith.extui %0 : i1 to i32
    %c0_i32_0 = arith.constant 0 : i32
    %2 = arith.cmpi ne, %1, %c0_i32_0 : i32
    scf.if %2 {
      %cst_30 = arith.constant 0.000000e+00 : f32
      %47 = vector.broadcast %cst_30 : f32 to vector<128x256xf32>
      %c0_31 = arith.constant 0 : index
      %c0_32 = arith.constant 0 : index
      %48 = vector.load %arg12[%c0_31, %c0_32] : memref<128x256xf32, #tpu.memory_space<vmem>>, vector<128x256xf32>
      tpu.vector_store %arg12[%c0_31, %c0_32], %47 {strides = array<i32>} : memref<128x256xf32, #tpu.memory_space<vmem>>, vector<128x256xf32>,
    } else {
    }
    %c0 = arith.constant 0 : index
    %c0_1 = arith.constant 0 : index
    %c0_2 = arith.constant 0 : index
    %3 = vector.load %arg2[%c0, %c0_1, %c0_2] : memref<1x128x256xbf16, #tpu.memory_space<vmem>>, vector<1x128x256xbf16>
    %4 = vector.shape_cast %3 : vector<1x128x256xbf16> to vector<128x256xbf16>
    %c0_3 = arith.constant 0 : index
    %c0_4 = arith.constant 0 : index
    %5 = vector.load %arg3[%c0_3, %c0_4] : memref<256x128xbf16, #tpu.memory_space<vmem>>, vector<256x128xbf16>
    %cst = arith.constant dense<0.000000e+00> : vector<128x128xf32>
    %6 = tpu.matmul %4, %5, %cst {dimension_numbers = #tpu.dot_dimension_numbers<[1], [0], [0], [1], [0, 0, 1, 1], [], []>} : vector<128x256xbf16>, vector<256x128xbf16>, vector<128x128xf32> -> vector<128x128xf32>
    %c0_5 = arith.constant 0 : index
    %c0_6 = arith.constant 0 : index
    %7 = vector.load %arg7[%c0_5, %c0_6] : memref<1x128xf32, #tpu.memory_space<vmem>>, vector<1x128xf32>
    %8 = vector.broadcast %7 : vector<1x128xf32> to vector<128x128xf32>
    %9 = arith.addf %6, %8 : vector<128x128xf32>
    %c0_7 = arith.constant 0 : index
    %c0_8 = arith.constant 0 : index
    %10 = vector.load %arg4[%c0_7, %c0_8] : memref<256x128xbf16, #tpu.memory_space<vmem>>, vector<256x128xbf16>
    %cst_9 = arith.constant dense<0.000000e+00> : vector<128x128xf32>
    %11 = tpu.matmul %4, %10, %cst_9 {dimension_numbers = #tpu.dot_dimension_numbers<[1], [0], [0], [1], [0, 0, 1, 1], [], []>} : vector<128x256xbf16>, vector<256x128xbf16>, vector<128x128xf32> -> vector<128x128xf32>
    %c0_10 = arith.constant 0 : index
    %c0_11 = arith.constant 0 : index
    %12 = vector.load %arg8[%c0_10, %c0_11] : memref<1x128xf32, #tpu.memory_space<vmem>>, vector<1x128xf32>
    %13 = vector.broadcast %12 : vector<1x128xf32> to vector<128x128xf32>
    %14 = arith.addf %11, %13 : vector<128x128xf32>
    %c0_12 = arith.constant 0 : index
    %c0_13 = arith.constant 0 : index
    %15 = vector.load %arg5[%c0_12, %c0_13] : memref<256x128xbf16, #tpu.memory_space<vmem>>, vector<256x128xbf16>
    %cst_14 = arith.constant dense<0.000000e+00> : vector<128x128xf32>
    %16 = tpu.matmul %4, %15, %cst_14 {dimension_numbers = #tpu.dot_dimension_numbers<[1], [0], [0], [1], [0, 0, 1, 1], [], []>} : vector<128x256xbf16>, vector<256x128xbf16>, vector<128x128xf32> -> vector<128x128xf32>
    %c0_15 = arith.constant 0 : index
    %c0_16 = arith.constant 0 : index
    %17 = vector.load %arg9[%c0_15, %c0_16] : memref<1x128xf32, #tpu.memory_space<vmem>>, vector<1x128xf32>
    %18 = vector.broadcast %17 : vector<1x128xf32> to vector<128x128xf32>
    %19 = arith.addf %16, %18 : vector<128x128xf32>
    %cst_17 = arith.constant 0.0883883461 : f32
    %20 = vector.broadcast %cst_17 : f32 to vector<128x128xf32>
    %21 = arith.mulf %9, %20 : vector<128x128xf32>
    %22 = arith.truncf %21 : vector<128x128xf32> to vector<128x128xbf16>
    %23 = arith.truncf %14 : vector<128x128xf32> to vector<128x128xbf16>
    %cst_18 = arith.constant dense<0.000000e+00> : vector<128x128xf32>
    %24 = tpu.matmul %22, %23, %cst_18 {dimension_numbers = #tpu.dot_dimension_numbers<[1], [1], [0], [0], [0, 0, 1, 0], [], []>} : vector<128x128xbf16>, vector<128x128xbf16>, vector<128x128xf32> -> vector<128x128xf32>
    %cst_19 = arith.constant dense<0xFF800000> : vector<128xf32>
    %25 = vector.multi_reduction <maximumf>, %24, %cst_19 [1] : vector<128x128xf32> to vector<128xf32>
    %26 = vector.shape_cast %25 : vector<128xf32> to vector<128x1xf32>
    %27 = vector.broadcast %26 : vector<128x1xf32> to vector<128x128xf32>
    %28 = arith.subf %24, %27 : vector<128x128xf32>
    %29 = math.exp %28 : vector<128x128xf32>
    %cst_20 = arith.constant dense<0.000000e+00> : vector<128xf32>
    %30 = vector.multi_reduction <add>, %29, %cst_20 [1] : vector<128x128xf32> to vector<128xf32>
    %31 = vector.shape_cast %30 : vector<128xf32> to vector<128x1xf32>
    %32 = arith.truncf %29 : vector<128x128xf32> to vector<128x128xbf16>
    %33 = arith.truncf %19 : vector<128x128xf32> to vector<128x128xbf16>
    %cst_21 = arith.constant dense<0.000000e+00> : vector<128x128xf32>
    %34 = tpu.matmul %32, %33, %cst_21 {dimension_numbers = #tpu.dot_dimension_numbers<[1], [0], [0], [1], [0, 0, 1, 1], [], []>} : vector<128x128xbf16>, vector<128x128xbf16>, vector<128x128xf32> -> vector<128x128xf32>
    %35 = tpu.reciprocal %31 {approx = true} : vector<128x1xf32> -> vector<128x1xf32>
    %36 = vector.broadcast %35 : vector<128x1xf32> to vector<128x128xf32>
    %37 = arith.mulf %34, %36 : vector<128x128xf32>
    %c0_22 = arith.constant 0 : index
    %c0_23 = arith.constant 0 : index
    %38 = vector.load %arg12[%c0_22, %c0_23] : memref<128x256xf32, #tpu.memory_space<vmem>>, vector<128x256xf32>
    %39 = arith.truncf %37 : vector<128x128xf32> to vector<128x128xbf16>
    %c0_24 = arith.constant 0 : index
    %c0_25 = arith.constant 0 : index
    %40 = vector.load %arg6[%c0_24, %c0_25] : memref<128x256xbf16, #tpu.memory_space<vmem>>, vector<128x256xbf16>
    %cst_26 = arith.constant dense<0.000000e+00> : vector<128x256xf32>
    %41 = tpu.matmul %39, %40, %cst_26 {dimension_numbers = #tpu.dot_dimension_numbers<[1], [0], [0], [1], [0, 0, 1, 1], [], []>} : vector<128x128xbf16>, vector<128x256xbf16>, vector<128x256xf32> -> vector<128x256xf32>
    %42 = arith.addf %38, %41 : vector<128x256xf32>
    %c0_27 = arith.constant 0 : index
    %c0_28 = arith.constant 0 : index
    %43 = vector.load %arg12[%c0_27, %c0_28] : memref<128x256xf32, #tpu.memory_space<vmem>>, vector<128x256xf32>
    tpu.vector_store %arg12[%c0_27, %c0_28], %42 {strides = array<i32>} : memref<128x256xf32, #tpu.memory_space<vmem>>, vector<128x256xf32>,
    %c1_i32 = arith.constant 1 : i32
    %44 = arith.cmpi eq, %arg1, %c1_i32 : i32
    %45 = arith.extui %44 : i1 to i32
    %c0_i32_29 = arith.constant 0 : i32
    %46 = arith.cmpi ne, %45, %c0_i32_29 : i32
    scf.if %46 {
      %c0_30 = arith.constant 0 : index
      %c0_31 = arith.constant 0 : index
      %47 = vector.load %arg12[%c0_30, %c0_31] : memref<128x256xf32, #tpu.memory_space<vmem>>, vector<128x256xf32>
      %c0_32 = arith.constant 0 : index
      %c0_33 = arith.constant 0 : index
      %48 = vector.load %arg10[%c0_32, %c0_33] : memref<1x256xf32, #tpu.memory_space<vmem>>, vector<1x256xf32>
      %49 = vector.broadcast %48 : vector<1x256xf32> to vector<128x256xf32>
      %50 = arith.addf %47, %49 : vector<128x256xf32>
      %c0_34 = arith.constant 0 : index
      %c0_35 = arith.constant 0 : index
      %c0_36 = arith.constant 0 : index
      %51 = vector.load %arg11[%c0_34, %c0_35, %c0_36] : memref<1x128x256xf32, #tpu.memory_space<vmem>>, vector<1x128x256xf32>
      %52 = vector.shape_cast %51 : vector<1x128x256xf32> to vector<128x256xf32>
      %53 = vector.shape_cast %50 : vector<128x256xf32> to vector<1x128x256xf32>
      tpu.vector_store %arg11[%c0_34, %c0_35, %c0_36], %53 {strides = array<i32>} : memref<1x128x256xf32, #tpu.memory_space<vmem>>, vector<1x128x256xf32>,
    } else {
    }
    return
  }
  func.func @transform_0(%arg0: i32, %arg1: i32) -> (i32, i32, i32) {
    %c0_i32 = arith.constant 0 : i32
    %c0_i32_0 = arith.constant 0 : i32
    %c0_i32_1 = arith.constant 0 : i32
    return %arg0, %c0_i32, %c0_i32_0 : i32, i32, i32
  }
  func.func @transform_1(%arg0: i32, %arg1: i32) -> (i32, i32) {
    %c0_i32 = arith.constant 0 : i32
    %c0_i32_0 = arith.constant 0 : i32
    return %c0_i32, %arg1 : i32, i32
  }
  func.func @transform_2(%arg0: i32, %arg1: i32) -> (i32, i32) {
    %c0_i32 = arith.constant 0 : i32
    %c0_i32_0 = arith.constant 0 : i32
    return %c0_i32, %arg1 : i32, i32
  }
  func.func @transform_3(%arg0: i32, %arg1: i32) -> (i32, i32) {
    %c0_i32 = arith.constant 0 : i32
    %c0_i32_0 = arith.constant 0 : i32
    return %c0_i32, %arg1 : i32, i32
  }
  func.func @transform_4(%arg0: i32, %arg1: i32) -> (i32, i32) {
    %c0_i32 = arith.constant 0 : i32
    %c0_i32_0 = arith.constant 0 : i32
    return %arg1, %c0_i32 : i32, i32
  }
  func.func @transform_5(%arg0: i32, %arg1: i32) -> (i32, i32) {
    %c0_i32 = arith.constant 0 : i32
    %c0_i32_0 = arith.constant 0 : i32
    return %c0_i32, %arg1 : i32, i32
  }
  func.func @transform_6(%arg0: i32, %arg1: i32) -> (i32, i32) {
    %c0_i32 = arith.constant 0 : i32
    %c0_i32_0 = arith.constant 0 : i32
    return %c0_i32, %arg1 : i32, i32
  }
  func.func @transform_7(%arg0: i32, %arg1: i32) -> (i32, i32) {
    %c0_i32 = arith.constant 0 : i32
    %c0_i32_0 = arith.constant 0 : i32
    return %c0_i32, %arg1 : i32, i32
  }
  func.func @transform_8(%arg0: i32, %arg1: i32) -> (i32, i32) {
    %c0_i32 = arith.constant 0 : i32
    %c0_i32_0 = arith.constant 0 : i32
    %c0_i32_1 = arith.constant 0 : i32
    return %c0_i32, %c0_i32_0 : i32, i32
  }
  func.func @transform_9(%arg0: i32, %arg1: i32) -> (i32, i32, i32) {
    %c0_i32 = arith.constant 0 : i32
    %c0_i32_0 = arith.constant 0 : i32
    %c0_i32_1 = arith.constant 0 : i32
    return %arg0, %c0_i32, %c0_i32_0 : i32, i32, i32
  }
}

</mosaic_0001>

<bundles_post_ra>
// kernel: tpu_custom_call.1
= control target key start
LH: loop header
LB: loop body
LE: loop exit
PB: predicated region body
PF: predicated region fallthrough
CT: control target
= control target key end

     0   :  { %s4196_s0 = inlined_call_operand.hbm [shape: bf16[2,128,256], index: 0, kind: input, shape index: {}]   ;;  %s4197_s1 = inlined_call_operand.hbm [shape: bf16[256,256], index: 1, kind: input, shape index: {}]   ;;  %s4198_s2 = inlined_call_operand.hbm [shape: bf16[256,256], index: 2, kind: input, shape index: {}]   ;;  %s4199_s3 = inlined_call_operand.hbm [shape: bf16[256,256], index: 3, kind: input, shape index: {}]   ;;  %s4200_s4 = inlined_call_operand.hbm [shape: bf16[256,256], index: 4, kind: input, shape index: {}]   ;;  %s4201_s5 = inlined_call_operand.vmem [shape: f32[1,256], index: 5, kind: input, shape index: {}]   ;;  %s4202_s6 = inlined_call_operand.vmem [shape: f32[1,256], index: 6, kind: input, shape index: {}]   ;;  %s4203_s7 = inlined_call_operand.vmem [shape: f32[1,256], index: 7, kind: input, shape index: {}]   ;;  %s4204_s8 = inlined_call_operand.hbm [shape: f32[1,256], index: 8, kind: input, shape index: {}]   ;;  %s4205_s9 = inlined_call_operand.hbm [shape: f32[2,128,256], index: 9, kind: output, shape index: {}]  }
   0x1   :  { %4222 = sst [smem:[#allocation40_spill]] %s4196_s0 }
   0x2   :  { %4223 = sst [smem:[#allocation41_spill]] %s4197_s1 }
   0x3   :  { %4224 = sst [smem:[#allocation42_spill]] %s4198_s2 }
   0x4   :  { %4225 = sst [smem:[#allocation43_spill]] %s4199_s3 }
   0x5   :  { %4226 = sst [smem:[#allocation44_spill]] %s4201_s5 }
   0x6   :  { %4227 = sst [smem:[#allocation45_spill]] %s4202_s6 }
   0x7   :  { %4228 = sst [smem:[#allocation46_spill]] %s4203_s7 }
   0x8   :  { %4229 = sst [smem:[#allocation47_spill]] %s4204_s8 }
   0x9   :  { %4230 = sst [smem:[#allocation48_spill]] %s4205_s9 }
   0xa   :  { %14 = vsyncpa [#allocation4], 0 }
   0xb   :  { %16 = vsyncpa [#allocation4 + $0x1], 0 }
   0xc   :  { %17 = vsyncpa [#allocation7], 0 }
   0xd   :  { %19 = vsyncpa [#allocation7 + $0x1], 0 }
   0xe   :  { %20 = vsyncpa [#allocation10], 0 }
   0xf   :  { %22 = vsyncpa [#allocation10 + $0x1], 0 }
  0x10   :  { %23 = vsyncpa [#allocation13], 0 }
  0x11   :  { %24 = vsyncpa [#allocation5], 0 }
  0x12   :  { %26 = vsyncpa [#allocation5 + $0x1], 0  ;;  %s3356_s30 = smov 0   ;;  %s3358_s10 = smov 0  }
  0x13   :  { %s3360_s11 = smov 0   ;;  %s3362_s12 = smov 0  }
  0x14   :  { %s3364_s13 = smov 0   ;;  %s3366_s14 = smov 0  }
  0x15   :  { %s3368_s15 = smov 0   ;;  %s3370_s16 = smov 0  }
  0x16   :  { %s3372_s17 = smov 0   ;;  %s3374_s18 = smov 0  }
  0x17   :  { %s3376_s19 = smov 0  }
  0x18 LB: > { %4231 = sst [smem:[#allocation20_spill]] %s3260_s10  ;;  %p59_p0 = scmp.eq.s32.totalorder %s3296_s19, 0  ;;  %s3296_s19 = sphi %s3376_s19, %s32_s19   ;;  %s3292_s18 = sphi %s3374_s18, %s4299_s18   ;;  %s3288_s17 = sphi %s3372_s17, %s4305_s17   ;;  %s3284_s16 = sphi %s3370_s16, %s4297_s16   ;;  %s3280_s15 = sphi %s3368_s15, %s4304_s15   ;;  %s3276_s14 = sphi %s3366_s14, %s4296_s14   ;;  %s3272_s13 = sphi %s3364_s13, %s4303_s13   ;;  %s3268_s12 = sphi %s3362_s12, %s4302_s12   ;;  %s3264_s11 = sphi %s3360_s11, %s4301_s11   ;;  %s3260_s10 = sphi %s3358_s10, %s4300_s10   ;;  %s3256_s30 = sphi %s3356_s30, %s4293_s30  }
  0x19   : > { %4232 = sst [smem:[#allocation21_spill]] %s3268_s12  ;;  %p84_p1 = scmp.ne.s32.totalorder %s3264_s11, %s3260_s10 }
  0x1a   : > { %4233 = sst [smem:[#allocation22_spill]] %s3276_s14  ;;  %p4210_p2 = scmp.lt.s32.totalorder %s3296_s19, 4 }
  0x1b   : > { %4234 = sst [smem:[#allocation23_spill]] %s3280_s15  ;;  %p86_p3 = por %p84_p1, %p59_p0 }
  0x1c   : > { %4235 = sst [smem:[#allocation24_spill]] %s3284_s16  ;;  %s351_s22 = sand.u32 1, %s3296_s19  }
  0x1d   : > { %4236 = sst [smem:[#allocation25_spill]] %s3292_s18  ;;  %s353_s23 = sand.u32 1, %s3264_s11  }
  0x1e   : > { %s3421_s24 = sshll.u32 %s353_s23, 7  ;;  %s3424_s25 = sshll.u32 %s3288_s17, 2 }
  0x1f   : > { %s4237_s1 = sld [smem:[#allocation41_spill]]  ;;  %s355_s29 = scalar_lea.vmem [#allocation6], %s3421_s24 }
  0x20   : > { %s362_s21 = sshll.u32 %s355_s29, 4  ;;  %p3433_p4 = pnand %p4210_p2, %p86_p3  ;;  %s363_s21 = int_to_ptr.vmem [resolvable:$true] %s362_s21 }
  0x21   : > { %s3437_s9 = scalar_lea.sflag [#allocation7], %s351_s22  ;;  %s4211_s26 = smov 128  }
  0x22   : > { %s4208_s27 = smov 64   ;;  %s4239_s3 = sld [smem:[#allocation43_spill]] }
  0x23   : > { %s397_s6 = scalar_lea.vmem [#allocation9], %s3421_s24  ;;  %s3450_s15 = scalar_lea.sflag [#allocation10], %s351_s22 }
  0x24   : > { %s404_s5 = sshll.u32 %s397_s6, 4  ;;  %p64_p5 = scmp.ne.s32.totalorder %s3272_s13, %s3268_s12  ;;  %s405_s5 = int_to_ptr.vmem [resolvable:$true] %s404_s5 }
  0x25   : > { %s359_s28 = scalar_lea.hbm %s4237_s1, %s3424_s25  ;;  %s2323_s1 = sadd.s32 4294967294, %s3296_s19  }
  0x26   : > { %s360_s20 = sshll.u32 %s359_s28, 4  ;;  %s4209_s28 = smov 4   ;;  %s361_s20 = int_to_ptr.hbm [resolvable:$true] %s360_s20 }
  0x27   : > { %2801 = dma.hbm_to_vmem [thread:$0]  (!%p3433_p4), %s361_s20, 2048, %s363_s21, %s3437_s9, %s4211_s26, %s4208_s27, %s4209_s28  }
  0x28   : > { %s401_s16 = scalar_lea.hbm %s4239_s3, %s3424_s25  ;;  %s3459_s20 = sadd.s32 4294967295, %s3296_s19  }
  0x29   : > { %s402_s7 = sshll.u32 %s401_s16, 4  ;;  %p65_p6 = scmp.eq.s32.totalorder %s3459_s20, 0  ;;  %s403_s7 = int_to_ptr.hbm [resolvable:$true] %s402_s7 }
  0x2a   : > { %2807 = dma.hbm_to_vmem [thread:$0]  (!%p3433_p4), %s403_s7, 2048, %s405_s5, %s3450_s15, %s4211_s26, %s4208_s27, %s4209_s28  }
  0x2b   : > { %p90_p7 = scmp.ne.s32.totalorder %s3260_s10, %s3256_s30  ;;  %p291_p8 = scmp.eq.s32.totalorder %s3459_s20, 3 }
  0x2c   : > { %p3470_p9 = por %p65_p6, %p64_p5  ;;  %p297_p10 = scmp.eq.s32.totalorder %s2323_s1, 3 }
  0x2d   : > { %p3476_p11 = por %p90_p7, %p65_p6  ;;  %p2324_p12 = scmp.ge.s32.totalorder %s3296_s19, 1 }
  0x2e   : > { %p3481_p13 = por %p297_p10, %p64_p5  ;;  %p304_p1 = scmp.lt.s32.totalorder %s3296_s19, 5 }
  0x2f   : > { %s4241_s5 = scalar_select %p3476_p11, 1, 0 }
  0x30   : > { %s4243_s7 = scalar_select %p3481_p13, 1, 0 }
  0x31   : > { %4242 = sst [smem:[#allocation26_spill]] %s4241_s5  ;;  %p3489_p3 = pnand %p2324_p12, %p304_p1 }
  0x32   : > { %4244 = sst [smem:[#allocation27_spill]] %s4243_s7  ;;  %s3301_s29 = smov [#allocation12]  }
  0x33   : > { %s4245_s8 = sld [smem:[#allocation47_spill]]  ;;  %p2791_p5 = pneg %p3489_p3 }
  0x34   : > { %s318_s1 = sshll.u32 %s3301_s29, 4  ;;  %s4247_s30 = sadd.s32 1, %s3288_s17  ;;  %s319_s1 = int_to_ptr.vmem [resolvable:$true] %s318_s1 }
  0x35   : > { %p2792_p7 = pnand %p2791_p5, %p65_p6  ;;  %p42_p10 = scmp.ge.s32.totalorder %s4247_s30, 2 }
  0x36   : > { %s44_s16 = sadd.s32 1, %s3292_s18  ;;  %s4248_s27 = smov %s4247_s30 }
  0x37   : > { %s4307_s27 = smov (%p42_p10, %s4248_s27), 0  ;;  %s4309_s16 = smov (!%p42_p10, %s44_s16), %s3292_s18 }
  0x38   : > { %4249 = sst [smem:[#allocation28_spill]] %s4307_s27  ;;  %s51_s28 = sadd.s32 1, %s3276_s14 }
  0x39   : > { %s316_s21 = sshll.u32 %s4245_s8, 4  ;;  %p58_p12 = scmp.ne.s32.totalorder %s3276_s14, %s3272_s13  ;;  %s317_s21 = int_to_ptr.hbm [resolvable:$true] %s316_s21 }
  0x3a   : > { %2794 = dma.hbm_to_vmem [thread:$0]  (!%p2792_p7), %s317_s21, 32, %s319_s1, [#allocation13]  }
  0x3b   : > { %p46_p1 = scmp.ge.s32.totalorder %s4309_s16, 2  ;;  %s74_s29 = ssub.s32 %s3288_s17, %s4307_s27 }
  0x3c   : > { %p3512_p2 = por %p59_p0, %p58_p12  ;;  %p75_p5 = scmp.eq.s32.totalorder %s74_s29, 0 }
  0x3d   : > { %s4311_s16 = smov (%p46_p1, %s4309_s16), 0  ;;  %s4252_s21 = sadd.s32 1, %s3264_s11 }
  0x3e   : > { %4251 = sst [smem:[#allocation29_spill]] %s4311_s16  ;;  %s48_s30 = ssub.s32 %s3292_s18, %s4311_s16 }
  0x3f   : > { %s3521_s1 = scalar_select %p75_p5, %s3264_s11, %s4252_s21  }
  0x40   : > { %p3527_p7 = por %p291_p8, %p58_p12  ;;  %p49_p0 = scmp.eq.s32.totalorder %s48_s30, 0 }
  0x41   : > { %4253 = sst [smem:[#allocation30_spill]] %s3521_s1  ;;  %s329_s8 = sand.u32 1, %s3276_s14  }
  0x42   : > { %s2327_s27 = sshll.u32 %s329_s8, 7  ;;  %s2675_s7 = sshll.u32 %s3292_s18, 7 }
  0x43   : > { %s3533_s29 = scalar_select %p49_p0, %s3276_s14, %s51_s28  }
  0x44   : > { %s4256_s0 = sld [smem:[#allocation40_spill]]  ;;  %s333_s21 = scalar_lea.vmem [#allocation3], %s2327_s27 }
  0x45   : > { %4255 = sst [smem:[#allocation31_spill]] %s3533_s29  ;;  %s341_s16 = sshll.u32 %s333_s21, 4  ;;  %s342_s16 = int_to_ptr.vmem [resolvable:$true] %s341_s16 }
  0x46   : > { %p4257_p8 = scmp.lt.s32.totalorder %s3296_s19, 4  ;;  %s4258_s2 = sld [smem:[#allocation42_spill]] }
  0x47   : > { %s330_s29 = scalar_lea.sflag [#allocation4], %s329_s8  ;;  %s3302_s12 = smov 8  }
  0x48   : > { %p2796_p10 = pnand %p4257_p8, %p3512_p2  ;;  %s4259_s5 = smov 128  }
  0x49   : > { %s4260_s26 = smov 4   ;;  %s4261_s21 = smov 64  }
  0x4a   : > { %s338_s10 = scalar_lea.hbm %s4256_s0, %s2675_s7  ;;  %s376_s7 = scalar_lea.vmem [#allocation8], %s3421_s24 }
  0x4b   : > { %s339_s1 = sshll.u32 %s338_s10, 4  ;;  %s383_s10 = sshll.u32 %s376_s7, 4  ;;  %s340_s1 = int_to_ptr.hbm [resolvable:$true] %s339_s1  ;;  %s384_s10 = int_to_ptr.vmem [resolvable:$true] %s383_s10 }
  0x4c   : > { %s380_s18 = scalar_lea.hbm %s4258_s2, %s3424_s25  ;;  %s2677_s0 = sshll.u32 %s3288_s17, 7 }
  0x4d   : > { %2798 = dma.hbm_to_vmem [thread:$0]  (!%p2796_p10), %s340_s1, 2048, %s342_s16, %s330_s29, %s4259_s5, %s4259_s5, %s3302_s12  }
  0x4e   : > { %s381_s27 = sshll.u32 %s380_s18, 4  ;;  %s424_s8 = scalar_lea.hbm %s4200_s4, %s2677_s0  ;;  %s382_s27 = int_to_ptr.hbm [resolvable:$true] %s381_s27 }
  0x4f   : > { %2804 = dma.hbm_to_vmem [thread:$0]  (!%p3433_p4), %s382_s27, 2048, %s384_s10, %s3437_s9, %s4259_s5, %s4261_s21, %s4260_s26  }
  0x50   : > { %s418_s28 = scalar_lea.vmem [#allocation11], %s3421_s24  ;;  %s425_s14 = sshll.u32 %s424_s8, 4  ;;  %s426_s14 = int_to_ptr.hbm [resolvable:$true] %s425_s14 }
  0x51   : > { %s427_s2 = sshll.u32 %s418_s28, 4  ;;  %457 = sbr.rel (%p3489_p3) target bundleno = 1291 (0x50b), region = 56  ;;  %s428_s2 = int_to_ptr.vmem [resolvable:$true] %s427_s2 }
  0x52   : > { %2810 = dma.hbm_to_vmem [thread:$0]  (!%p3433_p4), %s426_s14, 2048, %s428_s2, %s3450_s15, %s4259_s5, %s4259_s5, %s3302_s12  }
  0x56   : > { %s3569_s9 = sand.u32 1, %s3272_s13  }
  0x57   : > { %s2341_s18 = sshll.u32 %s3569_s9, 7  ;;  %s460_s0 = scalar_lea.sflag [#allocation4], %s3569_s9 }
  0x58   : > { %s3573_s24 = scalar_lea.vmem [#allocation3], %s2341_s18 }
  0x59   : > { %3235 = dma.done.wait (%p3470_p9), %s460_s0, 2048  }
  0x5a   : > { %3237 = vsyncadd (%p3470_p9), %s460_s0, 4294965248  ;;  %s4262_s2 = sld [smem:[#allocation20_spill]]  ;;  %s469_s15 = sand.u32 1, %s3459_s20  }
  0x5b   : > { %s470_s16 = scalar_lea.sflag [#allocation7], %s469_s15 }
  0x60   : > { %s471_s23 = sand.u32 1, %s4262_s2  }
  0x61   : > { %s2342_s22 = sshll.u32 %s471_s23, 7 }
  0x62   : > { %s3581_s1 = scalar_lea.vmem [#allocation6], %s2342_s22 }
  0x63   : > { %3239 = dma.done.wait (%p3476_p11), %s470_s16, 4096  }
  0x64   : > { %3241 = vsyncadd (%p3476_p11), %s470_s16, 4294963200  ;;  %s3587_s29 = scalar_lea.vmem [#allocation8], %s2342_s22  ;;  %s490_s12 = scalar_lea.sflag [#allocation10], %s469_s15 }
  0x65   : > { %s3589_s6 = scalar_lea.vmem [#allocation9], %s2342_s22 }
  0x66   : > { %3243 = dma.done.wait (%p3476_p11), %s490_s12, 4096  }
  0x67   : > { %3245 = vsyncadd (%p3476_p11), %s490_s12, 4294963200  ;;  %s3595_s5 = scalar_lea.vmem [#allocation11], %s2342_s22 }
  0x68   : > { %3247 = dma.done.wait (%p65_p6), [#allocation13], 32  }
  0x69   : > { %3249 = vsyncadd (%p65_p6), [#allocation13], 4294967264  ;;  %s4264_s27 = sld [smem:[#allocation23_spill]]  ;;  %s2347_s7 = sshll.u32 %s3569_s9, 8 }
  0x6a   : > { %s4265_s30 = sld [smem:[#allocation44_spill]]  ;;  %s3618_s23 = scalar_lea.vmem [#allocation14], %s2347_s7 }
  0x6b   : > { %s4266_s18 = sld [smem:[#allocation45_spill]] }
  0x6c   : > { %s4267_s14 = sld [smem:[#allocation46_spill]] }
  0x6f   : > { %p574_p2 = scmp.lt.s32.totalorder %s4264_s27, 1  ;;  %p2348_p4 = scmp.ne.s32.totalorder %s4264_s27, 0 }
  0x71   : > { %s3604_s10 = scalar_select %p574_p2, %s4264_s27, 1 }
  0x72   : > { %586 = sbr.rel (%p2348_p4) target bundleno = 152 (0x98), region = 84 }
  0x73   : > { %s576_s25 = scalar_lea.vmem %s4265_s30, %s3604_s10  ;;  %s579_s0 = scalar_lea.vmem %s4266_s18, %s3604_s10 }
  0x74   : > { %s582_s15 = scalar_lea.vmem %s4267_s14, %s3604_s10 }
  0x77   : > { %v3303_v0 = vmov 0.0  }
  0x78   : > { %587 = vst [vmem:[#allocation2 + $0xb0] sm:$0xff] %v3303_v0 }
  0x79   : > { %588 = vst [vmem:[#allocation2] sm:$0xff] %v3303_v0 }
  0x7a   : > { %589 = vst [vmem:[#allocation2 + $0xd8] sm:$0xff] %v3303_v0 }
  0x7b   : > { %590 = vst [vmem:[#allocation2 + $0x18] sm:$0xff] %v3303_v0 }
  0x7c   : > { %591 = vst [vmem:[#allocation2 + $0x50] sm:$0xff] %v3303_v0 }
  0x7d   : > { %592 = vst [vmem:[#allocation2 + $0x68] sm:$0xff] %v3303_v0 }
  0x7e   : > { %593 = vst [vmem:[#allocation2 + $0x30] sm:$0xff] %v3303_v0 }
  0x7f   : > { %594 = vst [vmem:[#allocation2 + $0x48] sm:$0xff] %v3303_v0 }
  0x80   : > { %595 = vst [vmem:[#allocation2 + $0x80] sm:$0xff] %v3303_v0 }
  0x81   : > { %596 = vst [vmem:[#allocation2 + $0x88] sm:$0xff] %v3303_v0 }
  0x82   : > { %597 = vst [vmem:[#allocation2 + $0xe8] sm:$0xff] %v3303_v0 }
  0x83   : > { %598 = vst [vmem:[#allocation2 + $0xb8] sm:$0xff] %v3303_v0 }
  0x84   : > { %599 = vst [vmem:[#allocation2 + $0x60] sm:$0xff] %v3303_v0 }
  0x85   : > { %600 = vst [vmem:[#allocation2 + $0xf0] sm:$0xff] %v3303_v0 }
  0x86   : > { %601 = vst [vmem:[#allocation2 + $0x8] sm:$0xff] %v3303_v0 }
  0x87   : > { %602 = vst [vmem:[#allocation2 + $0x78] sm:$0xff] %v3303_v0 }
  0x88   : > { %603 = vst [vmem:[#allocation2 + $0x38] sm:$0xff] %v3303_v0 }
  0x89   : > { %604 = vst [vmem:[#allocation2 + $0x58] sm:$0xff] %v3303_v0 }
  0x8a   : > { %605 = vst [vmem:[#allocation2 + $0x40] sm:$0xff] %v3303_v0 }
  0x8b   : > { %606 = vst [vmem:[#allocation2 + $0xc8] sm:$0xff] %v3303_v0 }
  0x8c   : > { %607 = vst [vmem:[#allocation2 + $0xe0] sm:$0xff] %v3303_v0 }
  0x8d   : > { %608 = vst [vmem:[#allocation2 + $0x90] sm:$0xff] %v3303_v0 }
  0x8e   : > { %609 = vst [vmem:[#allocation2 + $0x70] sm:$0xff] %v3303_v0 }
  0x8f   : > { %610 = vst [vmem:[#allocation2 + $0xc0] sm:$0xff] %v3303_v0 }
  0x90   : > { %611 = vst [vmem:[#allocation2 + $0xa8] sm:$0xff] %v3303_v0 }
  0x91   : > { %612 = vst [vmem:[#allocation2 + $0xd0] sm:$0xff] %v3303_v0 }
  0x92   : > { %613 = vst [vmem:[#allocation2 + $0x10] sm:$0xff] %v3303_v0 }
  0x93   : > { %614 = vst [vmem:[#allocation2 + $0x28] sm:$0xff] %v3303_v0 }
  0x94   : > { %615 = vst [vmem:[#allocation2 + $0xa0] sm:$0xff] %v3303_v0 }
  0x95   : > { %616 = vst [vmem:[#allocation2 + $0xf8] sm:$0xff] %v3303_v0 }
  0x96   : > { %617 = vst [vmem:[#allocation2 + $0x20] sm:$0xff] %v3303_v0 }
  0x97   : > { %618 = vst [vmem:[#allocation2 + $0x98] sm:$0xff] %v3303_v0 }
  0x98 PF: > { %v2701_v1 = vld [vmem:[%s3581_s1 + $0x38] sm:$0xff]  ;;  %v2700_v3 = vld [vmem:[%s3581_s1 + $0x30] sm:$0xff]  ;;  %v2699_v5 = vld [vmem:[%s3581_s1 + $0x28] sm:$0xff] }
  0x99   : > { %v2709_v2 = vld [vmem:[%s3581_s1 + $0x78] sm:$0xff]  ;;  %2759 = vmatpush.bf16.msra.mxu2 %v2701_v1  ;;  %v2708_v4 = vld [vmem:[%s3581_s1 + $0x70] sm:$0xff]  ;;  %847 = vmatpush.bf16.msra.mxu0 %v2701_v1  ;;  %v2707_v6 = vld [vmem:[%s3581_s1 + $0x68] sm:$0xff] }
  0x9a   : > { %2767 = vmatpush.bf16.msra.mxu3 %v2709_v2  ;;  %896 = vmatpush.bf16.msra.mxu1 %v2709_v2  ;;  %v2698_v7 = vld [vmem:[%s3581_s1 + $0x20] sm:$0xff]  ;;  %v2697_v9 = vld [vmem:[%s3581_s1 + $0x18] sm:$0xff]  ;;  %v2696_v11 = vld [vmem:[%s3581_s1 + $0x10] sm:$0xff] }
  0x9b   : > { %v2706_v8 = vld [vmem:[%s3581_s1 + $0x60] sm:$0xff]  ;;  %v2705_v10 = vld [vmem:[%s3581_s1 + $0x58] sm:$0xff]  ;;  %v2704_v12 = vld [vmem:[%s3581_s1 + $0x50] sm:$0xff] }
  0x9c   : > { %v2695_v13 = vld [vmem:[%s3581_s1 + $0x8] sm:$0xff]  ;;  %v2694_v15 = vld [vmem:[%s3581_s1] sm:$0xff]  ;;  %v2717_v23 = vld [vmem:[%s3587_s29 + $0x38] sm:$0xff] }
  0x9d   : > { %2760 = vmatpush.bf16.msra.mxu2 %v2700_v3  ;;  %848 = vmatpush.bf16.msra.mxu0 %v2700_v3  ;;  %v2703_v14 = vld [vmem:[%s3581_s1 + $0x48] sm:$0xff]  ;;  %v2702_v16 = vld [vmem:[%s3581_s1 + $0x40] sm:$0xff]  ;;  %v2725_v24 = vld [vmem:[%s3587_s29 + $0x78] sm:$0xff] }
  0x9e   : > { %2768 = vmatpush.bf16.msra.mxu3 %v2708_v4  ;;  %897 = vmatpush.bf16.msra.mxu1 %v2708_v4  ;;  %v2383_v17 = vld [vmem:[%s3573_s24 + $0x40] sm:$0xf]  ;;  %v2687_v18 = vld [vmem:[%s3573_s24 + $0x44] sm:$0xf0]  ;;  %v2686_v19 = vld [vmem:[%s3573_s24 + $0x44] sm:$0xf] }
  0x9f   : > { %v2385_v20 = vld [vmem:[%s3573_s24 + $0x48] sm:$0xf0]  ;;  %v3641_v21 = vor.u32 %v2687_v18, %v2383_v17  ;;  %v2716_v25 = vld [vmem:[%s3587_s29 + $0x30] sm:$0xff]  ;;  %v2689_v30 = vld [vmem:[%s3573_s24 + $0x54] sm:$0xf0] }
  0xa0   : > { %v3643_v22 = vor.u32 %v2686_v19, %v2385_v20  ;;  %v2724_v26 = vld [vmem:[%s3587_s29 + $0x70] sm:$0xff]  ;;  %v2715_v27 = vld [vmem:[%s3587_s29 + $0x28] sm:$0xff]  ;;  %v2393_v32 = vld [vmem:[%s3573_s24 + $0x58] sm:$0xf0] }
  0xa1   : > { %2761 = vmatpush.bf16.msra.mxu2 %v2699_v5  ;;  %849 = vmatpush.bf16.msra.mxu0 %v2699_v5  ;;  %v2723_v28 = vld [vmem:[%s3587_s29 + $0x68] sm:$0xff]  ;;  %v2391_v29 = vld [vmem:[%s3573_s24 + $0x50] sm:$0xf]  ;;  %v2688_v31 = vld [vmem:[%s3573_s24 + $0x54] sm:$0xf] }
  0xa2   : > { %2769 = vmatpush.bf16.msra.mxu3 %v2707_v6  ;;  %898 = vmatpush.bf16.msra.mxu1 %v2707_v6  ;;  %v2714_v33 = vld [vmem:[%s3587_s29 + $0x20] sm:$0xff]  ;;  %v3659_v35 = vor.u32 %v2689_v30, %v2391_v29  ;;  %v3661_v36 = vor.u32 %v2688_v31, %v2393_v32  ;;  %v2713_v37 = vld [vmem:[%s3587_s29 + $0x18] sm:$0xff]  ;;  %v2712_v39 = vld [vmem:[%s3587_s29 + $0x10] sm:$0xff] }
  0xa3   : > { %v2722_v34 = vld [vmem:[%s3587_s29 + $0x60] sm:$0xff]  ;;  %v2721_v38 = vld [vmem:[%s3587_s29 + $0x58] sm:$0xff]  ;;  %v2720_v40 = vld [vmem:[%s3587_s29 + $0x50] sm:$0xff] }
  0xa4   : > { %v2351_v41 = vld [vmem:[%s3573_s24] sm:$0xf]  ;;  %v2679_v42 = vld [vmem:[%s3573_s24 + $0x4] sm:$0xf0]  ;;  %v2690_v48 = vld [vmem:[%s3573_s24 + $0x64] sm:$0xf] }
  0xa5   : > { %2762 = vmatpush.bf16.msra.mxu2 %v2698_v7  ;;  %850 = vmatpush.bf16.msra.mxu0 %v2698_v7  ;;  %v3671_v43 = vor.u32 %v2679_v42, %v2351_v41  ;;  %v2711_v44 = vld [vmem:[%s3587_s29 + $0x8] sm:$0xff]  ;;  %v2399_v46 = vld [vmem:[%s3573_s24 + $0x60] sm:$0xf]  ;;  %v2678_v54 = vld [vmem:[%s3573_s24 + $0x4] sm:$0xf] }
  0xa6   : > { %2770 = vmatpush.bf16.msra.mxu3 %v2706_v8  ;;  %899 = vmatpush.bf16.msra.mxu1 %v2706_v8  ;;  %v2719_v45 = vld [vmem:[%s3587_s29 + $0x48] sm:$0xff]  ;;  %v2710_v50 = vld [vmem:[%s3587_s29] sm:$0xff]  ;;  %v2359_v57 = vld [vmem:[%s3573_s24 + $0x10] sm:$0xf] }
  0xa7   : > { %v2691_v47 = vld [vmem:[%s3573_s24 + $0x64] sm:$0xf0]  ;;  %v2401_v49 = vld [vmem:[%s3573_s24 + $0x68] sm:$0xf0]  ;;  %v2718_v51 = vld [vmem:[%s3587_s29 + $0x40] sm:$0xff] }
  0xa8   : > { %v3682_v52 = vor.u32 %v2691_v47, %v2399_v46  ;;  %v3684_v53 = vor.u32 %v2690_v48, %v2401_v49  ;;  %v2353_v55 = vld [vmem:[%s3573_s24 + $0x8] sm:$0xf0]  ;;  %v2681_v58 = vld [vmem:[%s3573_s24 + $0x14] sm:$0xf0]  ;;  %v2407_v60 = vld [vmem:[%s3573_s24 + $0x70] sm:$0xf] }
  0xa9   : > { %2763 = vmatpush.bf16.msra.mxu2 %v2697_v9  ;;  %851 = vmatpush.bf16.msra.mxu0 %v2697_v9  ;;  %v3688_v56 = vor.u32 %v2678_v54, %v2353_v55  ;;  %v3695_v59 = vor.u32 %v2681_v58, %v2359_v57  ;;  %v2693_v61 = vld [vmem:[%s3573_s24 + $0x74] sm:$0xf0]  ;;  %v2692_v62 = vld [vmem:[%s3573_s24 + $0x74] sm:$0xf]  ;;  %v2409_v63 = vld [vmem:[%s3573_s24 + $0x78] sm:$0xf0] }
  0xaa   : > { %2771 = vmatpush.bf16.msra.mxu3 %v2705_v10  ;;  %900 = vmatpush.bf16.msra.mxu1 %v2705_v10  ;;  %v3702_v0 = vor.u32 %v2693_v61, %v2407_v60  ;;  %v3704_v1 = vor.u32 %v2692_v62, %v2409_v63  ;;  %v2680_v2 = vld [vmem:[%s3573_s24 + $0x14] sm:$0xf]  ;;  %v2361_v3 = vld [vmem:[%s3573_s24 + $0x18] sm:$0xf0]  ;;  %v2367_v5 = vld [vmem:[%s3573_s24 + $0x20] sm:$0xf] }
  0xab   : > { %v3708_v4 = vor.u32 %v2680_v2, %v2361_v3  ;;  %v2683_v6 = vld [vmem:[%s3573_s24 + $0x24] sm:$0xf0]  ;;  %v2682_v8 = vld [vmem:[%s3573_s24 + $0x24] sm:$0xf]  ;;  %v2369_v9 = vld [vmem:[%s3573_s24 + $0x28] sm:$0xf0] }
  0xac   : > { %v3715_v7 = vor.u32 %v2683_v6, %v2367_v5  ;;  %v3720_v10 = vor.u32 %v2682_v8, %v2369_v9  ;;  %v3748_v17 = vld [vmem:[%s576_s25] ss:$0 sm:$0xff]  ;;  %v2733_v18 = vld [vmem:[%s3589_s6 + $0x38] sm:$0xff]  ;;  %v2739_v29 = vld [vmem:[%s3589_s6 + $0x68] sm:$0xff] }
  0xad   : > { %2764 = vmatpush.bf16.msra.mxu2 %v2696_v11  ;;  %852 = vmatpush.bf16.msra.mxu0 %v2696_v11  ;;  %v2375_v11 = vld [vmem:[%s3573_s24 + $0x30] sm:$0xf]  ;;  %v2741_v19 = vld [vmem:[%s3589_s6 + $0x78] sm:$0xff]  ;;  %v2730_v32 = vld [vmem:[%s3589_s6 + $0x20] sm:$0xff] }
  0xae   : > { %2772 = vmatpush.bf16.msra.mxu3 %v2704_v12  ;;  %901 = vmatpush.bf16.msra.mxu1 %v2704_v12  ;;  %v2685_v12 = vld [vmem:[%s3573_s24 + $0x34] sm:$0xf0]  ;;  %v2728_v42 = vld [vmem:[%s3589_s6 + $0x10] sm:$0xff]  ;;  %v2735_v46 = vld [vmem:[%s3589_s6 + $0x48] sm:$0xff] }
  0xaf   : > { %v2726_v49 = vld [vmem:[%s3589_s6] sm:$0xff] }
  0xb0   : > { %v3809_v3 = vld [vmem:[%s579_s0] ss:$0 sm:$0xff] }
  0xb1   : > { %2765 = vmatpush.bf16.msra.mxu2 %v2695_v13  ;;  %853 = vmatpush.bf16.msra.mxu0 %v2695_v13  ;;  %v3727_v13 = vor.u32 %v2685_v12, %v2375_v11 }
  0xb2   : > { %2773 = vmatpush.bf16.msra.mxu3 %v2703_v14  ;;  %902 = vmatpush.bf16.msra.mxu1 %v2703_v14  ;;  %v2684_v14 = vld [vmem:[%s3573_s24 + $0x34] sm:$0xf] }
  0xb5   : > { %2766 = vmatpush.bf16.msra.mxu2 %v2694_v15  ;;  %854 = vmatpush.bf16.msra.mxu0 %v2694_v15  ;;  %v2377_v15 = vld [vmem:[%s3573_s24 + $0x38] sm:$0xf0] }
  0xb6   : > { %2774 = vmatpush.bf16.msra.mxu3 %v2702_v16  ;;  %903 = vmatpush.bf16.msra.mxu1 %v2702_v16  ;;  %v3732_v16 = vor.u32 %v2684_v14, %v2377_v15 }
  0xb8   : > { %875 = vmatmul.bf16.vlgmr.msra.gmra.mxu2 %v3641_v21  ;;  %855 = vmatmul.bf16.vlgmr.msra.gmra.mxu0 %v3671_v43 }
  0xb9   : > { %924 = vmatmul.bf16.vlgmr.msra.gmra.mxu3 %v3643_v22  ;;  %1077 = vmatpush.bf16.msrb.mxu2 %v2717_v23 }
  0xba   : > { %1126 = vmatpush.bf16.msrb.mxu3 %v2725_v24  ;;  %904 = vmatmul.bf16.vlgmr.msra.gmra.mxu1 %v3688_v56 }
  0xbb   : > { %1307 = vmatpush.bf16.msrb.mxu0 %v2733_v18  ;;  %1356 = vmatpush.bf16.msrb.mxu1 %v2741_v19 }
  0xbd   : > { %1078 = vmatpush.bf16.msrb.mxu2 %v2716_v25 }
  0xbe   : > { %1127 = vmatpush.bf16.msrb.mxu3 %v2724_v26  ;;  %v2732_v26 = vld [vmem:[%s3589_s6 + $0x30] sm:$0xff] }
  0xbf   : > { %1308 = vmatpush.bf16.msrb.mxu0 %v2732_v26 }
  0xc1   : > { %1079 = vmatpush.bf16.msrb.mxu2 %v2715_v27  ;;  %v2740_v27 = vld [vmem:[%s3589_s6 + $0x70] sm:$0xff] }
  0xc2   : > { %1128 = vmatpush.bf16.msrb.mxu3 %v2723_v28  ;;  %1357 = vmatpush.bf16.msrb.mxu1 %v2740_v27  ;;  %v2731_v28 = vld [vmem:[%s3589_s6 + $0x28] sm:$0xff] }
  0xc3   : > { %1309 = vmatpush.bf16.msrb.mxu0 %v2731_v28 }
  0xc5   : > { %1080 = vmatpush.bf16.msrb.mxu2 %v2714_v33  ;;  %v2738_v33 = vld [vmem:[%s3589_s6 + $0x60] sm:$0xff] }
  0xc6   : > { %1129 = vmatpush.bf16.msrb.mxu3 %v2722_v34  ;;  %1358 = vmatpush.bf16.msrb.mxu1 %v2739_v29  ;;  %v2729_v34 = vld [vmem:[%s3589_s6 + $0x18] sm:$0xff] }
  0xc7   : > { %1310 = vmatpush.bf16.msrb.mxu0 %v2730_v32 }
  0xc8   : > { %880 = vmatmul.bf16.gmra.mxu2 %v3659_v35  ;;  %860 = vmatmul.bf16.gmra.mxu0 %v3695_v59 }
  0xc9   : > { %929 = vmatmul.bf16.gmra.mxu3 %v3661_v36  ;;  %1081 = vmatpush.bf16.msrb.mxu2 %v2713_v37  ;;  %v2737_v37 = vld [vmem:[%s3589_s6 + $0x58] sm:$0xff] }
  0xca   : > { %1130 = vmatpush.bf16.msrb.mxu3 %v2721_v38  ;;  %909 = vmatmul.bf16.gmra.mxu1 %v3708_v4 }
  0xcb   : > { %1359 = vmatpush.bf16.msrb.mxu1 %v2738_v33  ;;  %1311 = vmatpush.bf16.msrb.mxu0 %v2729_v34 }
  0xcd   : > { %1082 = vmatpush.bf16.msrb.mxu2 %v2712_v39 }
  0xce   : > { %1131 = vmatpush.bf16.msrb.mxu3 %v2720_v40 }
  0xcf   : > { %1360 = vmatpush.bf16.msrb.mxu1 %v2737_v37  ;;  %1312 = vmatpush.bf16.msrb.mxu0 %v2728_v42 }
  0xd1   : > { %1083 = vmatpush.bf16.msrb.mxu2 %v2711_v44  ;;  %v2736_v44 = vld [vmem:[%s3589_s6 + $0x50] sm:$0xff] }
  0xd2   : > { %1132 = vmatpush.bf16.msrb.mxu3 %v2719_v45  ;;  %v2727_v45 = vld [vmem:[%s3589_s6 + $0x8] sm:$0xff] }
  0xd3   : > { %1361 = vmatpush.bf16.msrb.mxu1 %v2736_v44  ;;  %1313 = vmatpush.bf16.msrb.mxu0 %v2727_v45 }
  0xd5   : > { %1084 = vmatpush.bf16.msrb.mxu2 %v2710_v50  ;;  %v2734_v50 = vld [vmem:[%s3589_s6 + $0x40] sm:$0xff] }
  0xd6   : > { %1133 = vmatpush.bf16.msrb.mxu3 %v2718_v51 }
  0xd7   : > { %1362 = vmatpush.bf16.msrb.mxu1 %v2735_v46  ;;  %1314 = vmatpush.bf16.msrb.mxu0 %v2726_v49 }
  0xd8   : > { %885 = vmatmul.bf16.gmra.mxu2 %v3682_v52  ;;  %865 = vmatmul.bf16.gmra.mxu0 %v3715_v7 }
  0xd9   : > { %934 = vmatmul.bf16.gmra.mxu3 %v3684_v53 }
  0xda   : > { %914 = vmatmul.bf16.gmra.mxu1 %v3720_v10 }
  0xdb   : > { %1363 = vmatpush.bf16.msrb.mxu1 %v2734_v50 }
  0xe8   : > { %890 = vmatmul.bf16.gmra.mxu2 %v3702_v0  ;;  %870 = vmatmul.bf16.gmra.mxu0 %v3727_v13 }
  0xe9   : > { %939 = vmatmul.bf16.gmra.mxu3 %v3704_v1 }
  0xea   : > { %919 = vmatmul.bf16.gmra.mxu1 %v3732_v16 }
  0xf8   : > { %1085 = vmatmul.bf16.vlgmr.msrb.gmra.mxu2 %v3671_v43  ;;  %1315 = vmatmul.bf16.vlgmr.msrb.gmra.mxu0 %v3671_v43 }
  0xf9   : > { %1134 = vmatmul.bf16.vlgmr.msrb.gmra.mxu3 %v3688_v56 }
  0xfa   : > { %1364 = vmatmul.bf16.vlgmr.msrb.gmra.mxu1 %v3688_v56 }
 0x108   : > { %1090 = vmatmul.bf16.gmra.mxu2 %v3695_v59  ;;  %1320 = vmatmul.bf16.gmra.mxu0 %v3695_v59 }
 0x109   : > { %1139 = vmatmul.bf16.gmra.mxu3 %v3708_v4 }
 0x10a   : > { %1369 = vmatmul.bf16.gmra.mxu1 %v3708_v4 }
 0x118   : > { %1095 = vmatmul.bf16.gmra.mxu2 %v3715_v7  ;;  %1325 = vmatmul.bf16.gmra.mxu0 %v3715_v7 }
 0x119   : > { %1144 = vmatmul.bf16.gmra.mxu3 %v3720_v10 }
 0x11a   : > { %1374 = vmatmul.bf16.gmra.mxu1 %v3720_v10 }
 0x128   : > { %1100 = vmatmul.bf16.gmra.mxu2 %v3727_v13  ;;  %1330 = vmatmul.bf16.gmra.mxu0 %v3727_v13 }
 0x129   : > { %1149 = vmatmul.bf16.gmra.mxu3 %v3732_v16 }
 0x12a   : > { %1379 = vmatmul.bf16.gmra.mxu1 %v3732_v16 }
 0x135   : > { %v856_v10 = vpop.f32.mrf.mxu0 }
 0x137   : > { %v905_v19 = vpop.f32.mrf.mxu1 }
 0x138   : > { %1105 = vmatmul.bf16.gmra.mxu2 %v3641_v21  ;;  %1335 = vmatmul.bf16.gmra.mxu0 %v3641_v21 }
 0x139   : > { %1154 = vmatmul.bf16.gmra.mxu3 %v3643_v22 }
 0x13a   : > { %1384 = vmatmul.bf16.gmra.mxu1 %v3643_v22 }
 0x13b   : > { %v876_v20 = vpop.f32.mrf.mxu2 }
 0x13c   : > { %v925_v23 = vpop.f32.mrf.mxu3  ;;  %v877_v24 = vadd.f32 %v3748_v17, %v876_v20  ;;  %v857_v20 = vadd.f32 %v3748_v17, %v856_v10 }
 0x13d   : > { %v3837_v16 = vpop.f32.mrf.mxu0 }
 0x13e   : > { %v3753_v25 = vadd.f32 %v925_v23, %v877_v24  ;;  %v3830_v26 = vadd.f32 %v905_v19, %v857_v20 }
 0x13f   : > { %v3839_v28 = vpop.f32.mrf.mxu1 }
 0x143   : > { %v3759_v30 = vpop.f32.mrf.mxu2 }
 0x144   : > { %v3761_v31 = vpop.f32.mrf.mxu3 }
 0x145   : > { %v861_v33 = vpop.f32.mrf.mxu0 }
 0x146   : > { %v862_v37 = vadd.f32 %v3748_v17, %v861_v33 }
 0x147   : > { %v910_v34 = vpop.f32.mrf.mxu1 }
 0x148   : > { %1110 = vmatmul.bf16.gmra.mxu2 %v3659_v35  ;;  %1340 = vmatmul.bf16.gmra.mxu0 %v3659_v35 }
 0x149   : > { %1159 = vmatmul.bf16.gmra.mxu3 %v3661_v36 }
 0x14a   : > { %1389 = vmatmul.bf16.gmra.mxu1 %v3661_v36 }
 0x14b   : > { %v881_v38 = vpop.f32.mrf.mxu2 }
 0x14c   : > { %v930_v39 = vpop.f32.mrf.mxu3  ;;  %v882_v40 = vadd.f32 %v3748_v17, %v881_v38 }
 0x14d   : > { %v3853_v42 = vpop.f32.mrf.mxu0 }
 0x14e   : > { %v3770_v41 = vadd.f32 %v930_v39, %v882_v40  ;;  %v3846_v40 = vadd.f32 %v910_v34, %v862_v37  ;;  %v3892_v34 = vld [vmem:[%s582_s15] ss:$0 sm:$0xff] }
 0x14f   : > { %v3855_v44 = vpop.f32.mrf.mxu1 }
 0x150   : > { %4269 = vst [vmem:[#allocation32_spill] sm:$0xff] %v3770_v41 }
 0x153   : > { %v3776_v47 = vpop.f32.mrf.mxu2 }
 0x154   : > { %v3778_v48 = vpop.f32.mrf.mxu3 }
 0x155   : > { %4270 = vst [vmem:[#allocation33_spill] sm:$0xff] %v3778_v48  ;;  %v866_v49 = vpop.f32.mrf.mxu0 }
 0x157   : > { %v915_v50 = vpop.f32.mrf.mxu1 }
 0x158   : > { %1115 = vmatmul.bf16.gmra.mxu2 %v3682_v52  ;;  %1345 = vmatmul.bf16.gmra.mxu0 %v3682_v52 }
 0x159   : > { %1164 = vmatmul.bf16.gmra.mxu3 %v3684_v53 }
 0x15a   : > { %1394 = vmatmul.bf16.gmra.mxu1 %v3684_v53 }
 0x15b   : > { %v886_v51 = vpop.f32.mrf.mxu2 }
 0x15c   : > { %v935_v54 = vpop.f32.mrf.mxu3  ;;  %v887_v55 = vadd.f32 %v3748_v17, %v886_v51  ;;  %v867_v51 = vadd.f32 %v3748_v17, %v866_v49 }
 0x15e   : > { %v3787_v57 = vadd.f32 %v935_v54, %v887_v55 }
 0x160   : > { %4271 = vst [vmem:[#allocation34_spill] sm:$0xff] %v3787_v57 }
 0x163   : > { %v3789_v58 = vpop.f32.mrf.mxu2 }
 0x164   : > { %4272 = vst [vmem:[#allocation35_spill] sm:$0xff] %v3789_v58  ;;  %v3791_v60 = vpop.f32.mrf.mxu3 }
 0x165   : > { %4273 = vst [vmem:[#allocation36_spill] sm:$0xff] %v3791_v60 }
 0x168   : > { %1120 = vmatmul.bf16.gmra.mxu2 %v3702_v0  ;;  %1350 = vmatmul.bf16.gmra.mxu0 %v3702_v0 }
 0x169   : > { %1169 = vmatmul.bf16.gmra.mxu3 %v3704_v1 }
 0x16a   : > { %1399 = vmatmul.bf16.gmra.mxu1 %v3704_v1 }
 0x16b   : > { %v891_v61 = vpop.f32.mrf.mxu2 }
 0x16c   : > { %v940_v62 = vpop.f32.mrf.mxu3  ;;  %v892_v63 = vadd.f32 %v3748_v17, %v891_v61  ;;  %v3862_v61 = vadd.f32 %v915_v50, %v867_v51 }
 0x16e   : > { %v3798_v43 = vadd.f32 %v940_v62, %v892_v63  ;;  %v3869_v62 = vpop.f32.mrf.mxu0  ;;  %v3871_v63 = vpop.f32.mrf.mxu1 }
 0x170   : > { %4274 = vst [vmem:[#allocation37_spill] sm:$0xff] %v3798_v43 }
 0x173   : > { %v3800_v56 = vpop.f32.mrf.mxu2 }
 0x174   : > { %4275 = vst [vmem:[#allocation38_spill] sm:$0xff] %v3800_v56  ;;  %v3802_v2 = vpop.f32.mrf.mxu3 }
 0x175   : > { %4276 = vst [vmem:[#allocation39_spill] sm:$0xff] %v3802_v2 }
 0x176   : > { %v920_v52 = vpop.f32.mrf.mxu1 }
 0x17b   : > { %v1086_v5 = vpop.f32.mrf.mxu2 }
 0x17c   : > { %v1135_v6 = vpop.f32.mrf.mxu3  ;;  %v1087_v8 = vadd.f32 %v3809_v3, %v1086_v5 }
 0x17e   : > { %v3814_v59 = vadd.f32 %v1135_v6, %v1087_v8 }
 0x183   : > { %v3816_v4 = vpop.f32.mrf.mxu2 }
 0x184   : > { %v3818_v9 = vpop.f32.mrf.mxu3 }
 0x18b   : > { %v1091_v11 = vpop.f32.mrf.mxu2 }
 0x18c   : > { %v1140_v12 = vpop.f32.mrf.mxu3  ;;  %v1092_v14 = vadd.f32 %v3809_v3, %v1091_v11 }
 0x18e   : > { %v3823_v15 = vadd.f32 %v1140_v12, %v1092_v14  ;;  %v871_v14 = vpop.f32.mrf.mxu0 }
 0x18f   : > { %v872_v53 = vadd.f32 %v3748_v17, %v871_v14 }
 0x191   : > { %v3879_v20 = vadd.f32 %v920_v52, %v872_v53 }
 0x193   : > { %v3825_v18 = vpop.f32.mrf.mxu2 }
 0x194   : > { %v3827_v7 = vpop.f32.mrf.mxu3 }
 0x19b   : > { %v1096_v23 = vpop.f32.mrf.mxu2 }
 0x19c   : > { %v1145_v24 = vpop.f32.mrf.mxu3  ;;  %v1097_v27 = vadd.f32 %v3809_v3, %v1096_v23  ;;  %v3883_v23 = vpop.f32.mrf.mxu0 }
 0x19e   : > { %v3835_v13 = vadd.f32 %v1145_v24, %v1097_v27  ;;  %v3885_v24 = vpop.f32.mrf.mxu1 }
 0x1a3   : > { %v3841_v29 = vpop.f32.mrf.mxu2 }
 0x1a4   : > { %v3843_v32 = vpop.f32.mrf.mxu3  ;;  %v1316_v37 = vpop.f32.mrf.mxu0 }
 0x1a5   : > { %v1317_v0 = vadd.f32 %v3892_v34, %v1316_v37 }
 0x1ab   : > { %v1101_v38 = vpop.f32.mrf.mxu2 }
 0x1ac   : > { %v1150_v39 = vpop.f32.mrf.mxu3  ;;  %v1102_v21 = vadd.f32 %v3809_v3, %v1101_v38  ;;  %v1365_v38 = vpop.f32.mrf.mxu1 }
 0x1ad   : > { %v3895_v49 = vadd.f32 %v1365_v38, %v1317_v0  ;;  %v3897_v1 = vpop.f32.mrf.mxu0 }
 0x1ae   : > { %v3851_v22 = vadd.f32 %v1150_v39, %v1102_v21 }
 0x1b3   : > { %v3857_v45 = vpop.f32.mrf.mxu2 }
 0x1b4   : > { %v3859_v46 = vpop.f32.mrf.mxu3  ;;  %v3899_v50 = vpop.f32.mrf.mxu1 }
 0x1bb   : > { %v1106_v54 = vpop.f32.mrf.mxu2 }
 0x1bc   : > { %v1155_v55 = vpop.f32.mrf.mxu3  ;;  %v1107_v35 = vadd.f32 %v3809_v3, %v1106_v54 }
 0x1be   : > { %v3867_v36 = vadd.f32 %v1155_v55, %v1107_v35  ;;  %v1321_v55 = vpop.f32.mrf.mxu0  ;;  %v1370_v35 = vpop.f32.mrf.mxu1 }
 0x1c3   : > { %v1108_v5 = vpop.f32.mrf.mxu2 }
 0x1c4   : > { %v1157_v6 = vpop.f32.mrf.mxu3  ;;  %v1109_v8 = vadd.f32 %v3809_v3, %v1108_v5 }
 0x1c6   : > { %v3874_v11 = vadd.f32 %v1157_v6, %v1109_v8  ;;  %v1322_v8 = vadd.f32 %v3892_v34, %v1321_v55  ;;  %v3905_v53 = vpop.f32.mrf.mxu0  ;;  %v3907_v37 = vpop.f32.mrf.mxu1 }
 0x1c8   : > { %v3902_v14 = vadd.f32 %v1370_v35, %v1322_v8 }
 0x1cb   : > { %v1111_v10 = vpop.f32.mrf.mxu2 }
 0x1cc   : > { %v1160_v19 = vpop.f32.mrf.mxu3 }
 0x1ce   : > { %v1326_v55 = vpop.f32.mrf.mxu0  ;;  %v1375_v35 = vpop.f32.mrf.mxu1 }
 0x1d3   : > { %v1113_v27 = vpop.f32.mrf.mxu2 }
 0x1d4   : > { %v1162_v33 = vpop.f32.mrf.mxu3  ;;  %v1114_v48 = vadd.f32 %v3809_v3, %v1113_v27 }
 0x1db   : > { %v1116_v39 = vpop.f32.mrf.mxu2 }
 0x1dc   : > { %v1165_v21 = vpop.f32.mrf.mxu3  ;;  %v1117_v60 = vadd.f32 %v3809_v3, %v1116_v39 }
 0x1de   : > { %v1166_v41 = vadd.f32 %v1165_v21, %v1117_v60  ;;  %v4279_v60 = vpack.c.bf16 %v3874_v11, %v3867_v36  ;;  %v1094_v11 = vadd.f32 %v3809_v3, %v3825_v18 }
 0x1e3   : > { %v1118_v51 = vpop.f32.mrf.mxu2 }
 0x1e4   : > { %v1167_v54 = vpop.f32.mrf.mxu3  ;;  %v1119_v56 = vadd.f32 %v3809_v3, %v1118_v51 }
 0x1e6   : > { %v1168_v8 = vadd.f32 %v1167_v54, %v1119_v56 }
 0x1eb   : > { %v1121_v5 = vpop.f32.mrf.mxu2 }
 0x1ec   : > { %v1170_v6 = vpop.f32.mrf.mxu3  ;;  %v1122_v52 = vadd.f32 %v3809_v3, %v1121_v5  ;;  %v1327_v5 = vadd.f32 %v3892_v34, %v1326_v55 }
 0x1ee   : > { %v1171_v43 = vadd.f32 %v1170_v6, %v1122_v52  ;;  %v3913_v58 = vadd.f32 %v1375_v35, %v1327_v5  ;;  %v1112_v6 = vadd.f32 %v3809_v3, %v1111_v10 }
 0x1f3   : > { %v1123_v38 = vpop.f32.mrf.mxu2 }
 0x1f4   : > { %v1124_v0 = vadd.f32 %v3809_v3, %v1123_v38  ;;  %v1172_v12 = vpop.f32.mrf.mxu3  ;;  %v1435_v38 = vpack.c.bf16 %v1168_v8, %v1166_v41  ;;  %v1104_v41 = vadd.f32 %v3809_v3, %v3857_v45 }
 0x1f6   : > { %v1173_v2 = vadd.f32 %v1172_v12, %v1124_v0  ;;  %v3917_v12 = vpop.f32.mrf.mxu0 }
 0x1f8   : > { %v1436_v57 = vpack.c.bf16 %v1173_v2, %v1171_v43  ;;  %v3919_v43 = vpop.f32.mrf.mxu1  ;;  %v1163_v2 = vadd.f32 %v1162_v33, %v1114_v48  ;;  %v1153_v48 = vadd.f32 %v3859_v46, %v1104_v41 }
 0x1fa   : > { %1437 = vmatpush.bf16.xpose.msra.mxu2 %v1436_v57  ;;  %v1161_v57 = vadd.f32 %v1160_v19, %v1112_v6  ;;  %v1099_v19 = vadd.f32 %v3809_v3, %v3841_v29  ;;  %v1432_v33 = vpack.c.bf16 %v1153_v48, %v3851_v22  ;;  %v1143_v29 = vadd.f32 %v3827_v7, %v1094_v11 }
 0x1fb   : > { %v1089_v22 = vadd.f32 %v3809_v3, %v3816_v4  ;;  %v859_v6 = vadd.f32 %v3748_v17, %v3837_v16 }
 0x1fc   : > { %v1434_v39 = vpack.c.bf16 %v1163_v2, %v1161_v57  ;;  %v1148_v55 = vadd.f32 %v3843_v32, %v1099_v19  ;;  %v1430_v8 = vpack.c.bf16 %v1143_v29, %v3823_v15 }
 0x1fd   : > { %v1138_v18 = vadd.f32 %v3818_v9, %v1089_v22 }
 0x1fe   : > { %v1331_v51 = vpop.f32.mrf.mxu0  ;;  %v1431_v35 = vpack.c.bf16 %v1148_v55, %v3835_v13  ;;  %v908_v13 = vadd.f32 %v3839_v28, %v859_v6  ;;  %v1407_v28 = vmul.f32 0.088388346, %v3846_v40  ;;  %v1409_v40 = vmul.f32 0.088388346, %v3862_v61 }
 0x1ff   : > { %v1332_v56 = vadd.f32 %v3892_v34, %v1331_v51  ;;  %v1429_v2 = vpack.c.bf16 %v1138_v18, %v3814_v59  ;;  %v874_v61 = vadd.f32 %v3748_v17, %v3883_v23  ;;  %v1324_v23 = vadd.f32 %v3892_v34, %v3905_v53 }
 0x200   : > { %v1380_v52 = vpop.f32.mrf.mxu1  ;;  %v1406_v3 = vmul.f32 0.088388346, %v908_v13 }
 0x201   : > { %v3922_v54 = vadd.f32 %v1380_v52, %v1332_v56  ;;  %v864_v52 = vadd.f32 %v3748_v17, %v3853_v42 }
 0x202   : > { %1438 = vmatpush.bf16.xpose.msra.mxu2 %v1435_v38 }
 0x203   : > { %v913_v16 = vadd.f32 %v3855_v44, %v864_v52 }
 0x205   : > { %v1408_v59 = vmul.f32 0.088388346, %v913_v16 }
 0x206   : > { %v3929_v10 = vpop.f32.mrf.mxu0 }
 0x207   : > { %v1422_v41 = vpack.c.bf16 %v1408_v59, %v1407_v28  ;;  %v4283_v28 = vld [vmem:[#allocation36_spill] sm:$0xff] }
 0x208   : > { %v3931_v27 = vpop.f32.mrf.mxu1 }
 0x20a   : > { %1439 = vmatpush.bf16.xpose.msra.mxu2 %v1434_v39  ;;  %v1405_v39 = vmul.f32 0.088388346, %v3830_v26  ;;  %v869_v26 = vadd.f32 %v3748_v17, %v3869_v62 }
 0x20c   : > { %v1421_v4 = vpack.c.bf16 %v1406_v3, %v1405_v39  ;;  %v918_v19 = vadd.f32 %v3871_v63, %v869_v26  ;;  %v4285_v26 = vld [vmem:[#allocation38_spill] sm:$0xff] }
 0x20e   : > { %v1336_v21 = vpop.f32.mrf.mxu0 }
 0x20f   : > { %v1337_v45 = vadd.f32 %v3892_v34, %v1336_v21 }
 0x210   : > { %v1385_v0 = vpop.f32.mrf.mxu1 }
 0x211   : > { %v3939_v36 = vadd.f32 %v1385_v0, %v1337_v45  ;;  %v1410_v45 = vmul.f32 0.088388346, %v918_v19  ;;  %v4286_v19 = vld [vmem:[#allocation39_spill] sm:$0xff] }
 0x212   : > { %1440 = vmatpush.bf16.xpose.msra.mxu2 %v4279_v60 }
 0x216   : > { %v1338_v46 = vpop.f32.mrf.mxu0 }
 0x217   : > { %v1339_v18 = vadd.f32 %v3892_v34, %v1338_v46 }
 0x218   : > { %v1387_v5 = vpop.f32.mrf.mxu1 }
 0x219   : > { %v1388_v3 = vadd.f32 %v1387_v5, %v1339_v18 }
 0x21a   : > { %1441 = vmatpush.bf16.xpose.msra.mxu2 %v1432_v33 }
 0x21e   : > { %v1341_v38 = vpop.f32.mrf.mxu0 }
 0x220   : > { %v1390_v32 = vpop.f32.mrf.mxu1 }
 0x222   : > { %1442 = vmatpush.bf16.xpose.msra.mxu2 %v1431_v35  ;;  %v1342_v35 = vadd.f32 %v3892_v34, %v1341_v38  ;;  %v1334_v38 = vadd.f32 %v3892_v34, %v3929_v10 }
 0x224   : > { %v1391_v13 = vadd.f32 %v1390_v32, %v1342_v35  ;;  %v1383_v46 = vadd.f32 %v3931_v27, %v1334_v38  ;;  %v1610_v32 = vpack.c.bf16 %v1388_v3, %v3939_v36  ;;  %v1373_v27 = vadd.f32 %v3907_v37, %v1324_v23 }
 0x225   : > { %v884_v37 = vadd.f32 %v3748_v17, %v3776_v47  ;;  %v894_v47 = vadd.f32 %v3748_v17, %v4285_v26  ;;  %v2757_v26 = vld [vmem:[%s3595_s5 + $0x74] sm:$0xf0] }
 0x226   : > { %v1343_v57 = vpop.f32.mrf.mxu0  ;;  %v1609_v5 = vpack.c.bf16 %v1383_v46, %v3922_v54 }
 0x227   : > { %v1344_v62 = vadd.f32 %v3892_v34, %v1343_v57 }
 0x228   : > { %v1392_v7 = vpop.f32.mrf.mxu1 }
 0x22a   : > { %1443 = vmatpush.bf16.xpose.msra.mxu2 %v1430_v8  ;;  %v1423_v8 = vpack.c.bf16 %v1410_v45, %v1409_v40 }
 0x22e   : > { %v1346_v15 = vpop.f32.mrf.mxu0 }
 0x22f   : > { %v1347_v42 = vadd.f32 %v3892_v34, %v1346_v15  ;;  %v1329_v15 = vadd.f32 %v3892_v34, %v3917_v12  ;;  %v1319_v12 = vadd.f32 %v3892_v34, %v3897_v1  ;;  %v1413_v1 = vmul.f32 0.088388346, %v3753_v25  ;;  %v4284_v25 = vld [vmem:[#allocation34_spill] sm:$0xff] }
 0x230   : > { %v1395_v51 = vpop.f32.mrf.mxu1 }
 0x231   : > { %v1396_v29 = vadd.f32 %v1395_v51, %v1347_v42  ;;  %v1378_v10 = vadd.f32 %v3919_v43, %v1329_v15  ;;  %v1368_v53 = vadd.f32 %v3899_v50, %v1319_v12  ;;  %v1607_v43 = vpack.c.bf16 %v1373_v27, %v3902_v14 }
 0x232   : > { %1444 = vmatpush.bf16.xpose.msra.mxu2 %v1429_v2  ;;  %v1393_v2 = vadd.f32 %v1392_v7, %v1344_v62  ;;  %v1411_v7 = vmul.f32 0.088388346, %v3879_v20  ;;  %v879_v20 = vadd.f32 %v3748_v17, %v3759_v30  ;;  %v4280_v30 = vld [vmem:[#allocation33_spill] sm:$0xff] }
 0x233   : > { %v1608_v36 = vpack.c.bf16 %v1378_v10, %v3913_v58  ;;  %v1606_v52 = vpack.c.bf16 %v1368_v53, %v3895_v49  ;;  %v933_v16 = vadd.f32 %v4280_v30, %v884_v37 }
 0x234   : > { %v1611_v57 = vpack.c.bf16 %v1393_v2, %v1391_v13  ;;  %v928_v54 = vadd.f32 %v3761_v31, %v879_v20  ;;  %v4282_v31 = vld [vmem:[#allocation35_spill] sm:$0xff] }
 0x235   : > { %v1416_v50 = vmul.f32 0.088388346, %v933_v16  ;;  %v889_v49 = vadd.f32 %v3748_v17, %v4282_v31 }
 0x236   : > { %v1348_v9 = vpop.f32.mrf.mxu0 }
 0x237   : > { %v1349_v44 = vadd.f32 %v3892_v34, %v1348_v9  ;;  %v4281_v9 = vld [vmem:[#allocation32_spill] sm:$0xff]  ;;  %v938_v59 = vadd.f32 %v4283_v28, %v889_v49 }
 0x238   : > { %v1397_v56 = vpop.f32.mrf.mxu1  ;;  %v1415_v14 = vmul.f32 0.088388346, %v4281_v9 }
 0x239   : > { %1445 = vmatmul.bf16.vlgmr.msra.gmra.mxu2 %v1421_v4  ;;  %v1398_v63 = vadd.f32 %v1397_v56, %v1349_v44  ;;  %v923_v4 = vadd.f32 %v3885_v24, %v874_v61  ;;  %v4287_v44 = vld [vmem:[#allocation37_spill] sm:$0xff] }
 0x23a   : > { %v1426_v56 = vpack.c.bf16 %v1416_v50, %v1415_v14 }
 0x23b   : > { %v1612_v39 = vpack.c.bf16 %v1398_v63, %v1396_v29  ;;  %v1412_v51 = vmul.f32 0.088388346, %v923_v4 }
 0x23d   : > { %v1424_v24 = vpack.c.bf16 %v1412_v51, %v1411_v7 }
 0x23e   : > { %v1351_v60 = vpop.f32.mrf.mxu0 }
 0x23f   : > { %v1352_v33 = vadd.f32 %v3892_v34, %v1351_v60  ;;  %v1417_v60 = vmul.f32 0.088388346, %v4284_v25 }
 0x240   : > { %v1400_v48 = vpop.f32.mrf.mxu1 }
 0x241   : > { %v1401_v55 = vadd.f32 %v1400_v48, %v1352_v33  ;;  %v943_v33 = vadd.f32 %v4286_v19, %v894_v47  ;;  %v2756_v47 = vld [vmem:[%s3595_s5 + $0x74] sm:$0xf] }
 0x243   : > { %v1420_v42 = vmul.f32 0.088388346, %v943_v33  ;;  %v2665_v33 = vld [vmem:[%s3595_s5 + $0x78] sm:$0xf0] }
 0x246   : > { %v1353_v21 = vpop.f32.mrf.mxu0 }
 0x247   : > { %v1354_v11 = vadd.f32 %v3892_v34, %v1353_v21  ;;  %v1414_v34 = vmul.f32 0.088388346, %v928_v54  ;;  %v1419_v21 = vmul.f32 0.088388346, %v4287_v44  ;;  %v2668_v44 = vor.u32 %v2756_v47, %v2665_v33  ;;  %v2615_v47 = vld [vmem:[%s3595_s5 + $0x10] sm:$0xf] }
 0x248   : > { %v1402_v0 = vpop.f32.mrf.mxu1  ;;  %v2744_v33 = vld [vmem:[%s3595_s5 + $0x14] sm:$0xf] }
 0x249   : > { %1450 = vmatmul.bf16.gmra.mxu2 %v1422_v41  ;;  %v1403_v22 = vadd.f32 %v1402_v0, %v1354_v11  ;;  %v1425_v58 = vpack.c.bf16 %v1414_v34, %v1413_v1  ;;  %v1418_v41 = vmul.f32 0.088388346, %v938_v59  ;;  %v1428_v0 = vpack.c.bf16 %v1420_v42, %v1419_v21  ;;  %1880 = vmatpush.bf16.msra.mxu1 %v2668_v44 }
 0x24b   : > { %v1613_v6 = vpack.c.bf16 %v1403_v22, %v1401_v55  ;;  %v1427_v48 = vpack.c.bf16 %v1418_v41, %v1417_v60 }
 0x24d   : > { %1614 = vmatpush.bf16.msra.mxu3 %v1613_v6 }
 0x251   : > { %1615 = vmatpush.bf16.msra.mxu3 %v1612_v39 }
 0x255   : > { %1616 = vmatpush.bf16.msra.mxu3 %v1611_v57 }
 0x259   : > { %1455 = vmatmul.bf16.gmra.mxu2 %v1423_v8  ;;  %1617 = vmatpush.bf16.msra.mxu3 %v1610_v32 }
 0x25d   : > { %1618 = vmatpush.bf16.msra.mxu3 %v1609_v5 }
 0x261   : > { %1619 = vmatpush.bf16.msra.mxu3 %v1608_v36 }
 0x265   : > { %1620 = vmatpush.bf16.msra.mxu3 %v1607_v43 }
 0x269   : > { %1460 = vmatmul.bf16.gmra.mxu2 %v1424_v24  ;;  %1621 = vmatpush.bf16.msra.mxu3 %v1606_v52 }
 0x279   : > { %1465 = vmatmul.bf16.gmra.mxu2 %v1425_v58 }
 0x289   : > { %1470 = vmatmul.bf16.gmra.mxu2 %v1426_v56 }
 0x299   : > { %1475 = vmatmul.bf16.gmra.mxu2 %v1427_v48  ;;  %v2663_v48 = vld [vmem:[%s3595_s5 + $0x70] sm:$0xf] }
 0x29a   : > { %v2664_v19 = vor.u32 %v2757_v26, %v2663_v48  ;;  %v2625_v48 = vld [vmem:[%s3595_s5 + $0x28] sm:$0xf0] }
 0x29c   : > { %1831 = vmatpush.bf16.msra.mxu0 %v2664_v19  ;;  %v2745_v19 = vld [vmem:[%s3595_s5 + $0x14] sm:$0xf0] }
 0x2a9   : > { %1480 = vmatmul.bf16.gmra.mxu2 %v1428_v0 }
 0x2bc   : > { %v1446_v40 = vpop.f32.mrf.mxu2 }
 0x2bd   : > { %1486 = vmax.xlane.f32.xlu0 %v1446_v40 }
 0x2c4   : > { %v1448_v45 = vpop.f32.mrf.mxu2 }
 0x2c5   : > { %1488 = vmax.xlane.f32.xlu0 %v1448_v45 }
 0x2cc   : > { %v1451_v55 = vpop.f32.mrf.mxu2 }
 0x2cd   : > { %1490 = vmax.xlane.f32.xlu1 %v1451_v55 }
 0x2d4   : > { %v1453_v11 = vpop.f32.mrf.mxu2 }
 0x2d5   : > { %1492 = vmax.xlane.f32.xlu1 %v1453_v11 }
 0x2dc   : > { %v1456_v35 = vpop.f32.mrf.mxu2 }
 0x2dd   : > { %1494 = vmax.xlane.f32.xlu2 %v1456_v35 }
 0x2e4   : > { %v1458_v62 = vpop.f32.mrf.mxu2 }
 0x2e5   : > { %1496 = vmax.xlane.f32.xlu2 %v1458_v62 }
 0x2ec   : > { %v1461_v17 = vpop.f32.mrf.mxu2 }
 0x2ed   : > { %1498 = vmax.xlane.f32.xlu0 %v1461_v17 }
 0x2f4   : > { %v4006_v29 = vpop.f32.mrf.mxu2 }
 0x2f5   : > { %1500 = vmax.xlane.f32.xlu1 %v4006_v29 }
 0x2fc   : > { %v4009_v63 = vpop.f32.mrf.mxu2 }
 0x2fd   : > { %1502 = vmax.xlane.f32.xlu2 %v4009_v63 }
 0x304   : > { %v4012_v22 = vpop.f32.mrf.mxu2 }
 0x305   : > { %1504 = vmax.xlane.f32.xlu0 %v4012_v22 }
 0x30c   : > { %v4015_v8 = vpop.f32.mrf.mxu2 }
 0x30d   : > { %1506 = vmax.xlane.f32.xlu1 %v4015_v8 }
 0x314   : > { %v4018_v6 = vpop.f32.mrf.mxu2 }
 0x315   : > { %1508 = vmax.xlane.f32.xlu2 %v4018_v6 }
 0x31c   : > { %v4021_v18 = vpop.f32.mrf.mxu2 }
 0x31d   : > { %1510 = vmax.xlane.f32.xlu0 %v4021_v18 }
 0x324   : > { %v4024_v13 = vpop.f32.mrf.mxu2 }
 0x325   : > { %1512 = vmax.xlane.f32.xlu1 %v4024_v13 }
 0x32c   : > { %v4027_v2 = vpop.f32.mrf.mxu2 }
 0x32d   : > { %1514 = vmax.xlane.f32.xlu2 %v4027_v2 }
 0x330   : > { %v1487_v39 = vpop.xlane.xlu0 %1486 }
 0x331   : > { %v1518_v61 = vsub.f32 %v1446_v40, %v1487_v39  ;;  %v2657_v39 = vld [vmem:[%s3595_s5 + $0x68] sm:$0xf0] }
 0x333   : > { %v1534_v38 = vmul.f32 1.442695, %v1518_v61 }
 0x334   : > { %v4030_v3 = vpop.f32.mrf.mxu2 }
 0x335   : > { %2918 = vpow2.f32 %v1534_v38  ;;  %1516 = vmax.xlane.f32.xlu0 %v4030_v3 }
 0x338   : > { %v1489_v57 = vpop.xlane.xlu0 %1488 }
 0x339   : > { %v1519_v4 = vsub.f32 %v1448_v45, %v1489_v57 }
 0x33b   : > { %v2919_v15 = vpop.eup %2918  ;;  %v1536_v46 = vmul.f32 1.442695, %v1519_v4 }
 0x33c   : > { %1566 = vadd.xlane.f32.xlu1 %v2919_v15 }
 0x33d   : > { %2920 = vpow2.f32 %v1536_v46 }
 0x340   : > { %v1491_v32 = vpop.xlane.xlu1 %1490 }
 0x341   : > { %v1520_v7 = vsub.f32 %v1451_v55, %v1491_v32 }
 0x343   : > { %v2921_v51 = vpop.eup %2920  ;;  %v1538_v23 = vmul.f32 1.442695, %v1520_v7 }
 0x344   : > { %v1598_v10 = vpack.c.bf16 %v2921_v51, %v2919_v15  ;;  %1568 = vadd.xlane.f32.xlu2 %v2921_v51 }
 0x345   : > { %2922 = vpow2.f32 %v1538_v23  ;;  %v2753_v23 = vld [vmem:[%s3595_s5 + $0x54] sm:$0xf0] }
 0x346   : > { %1622 = vmatmul.bf16.vlgmr.msra.gmra.mxu3 %v1598_v10  ;;  %v2752_v10 = vld [vmem:[%s3595_s5 + $0x54] sm:$0xf] }
 0x348   : > { %v1493_v5 = vpop.xlane.xlu1 %1492 }
 0x349   : > { %v1521_v24 = vsub.f32 %v1453_v11, %v1493_v5 }
 0x34b   : > { %v2923_v12 = vpop.eup %2922  ;;  %v1540_v27 = vmul.f32 1.442695, %v1521_v24  ;;  %v2649_v24 = vld [vmem:[%s3595_s5 + $0x58] sm:$0xf0] }
 0x34c   : > { %1570 = vadd.xlane.f32.xlu0 %v2923_v12 }
 0x34d   : > { %2924 = vpow2.f32 %v1540_v27  ;;  %v2652_v27 = vor.u32 %v2752_v10, %v2649_v24 }
 0x350   : > { %v1495_v36 = vpop.xlane.xlu2 %1494 }
 0x351   : > { %v1522_v20 = vsub.f32 %v1456_v35, %v1495_v36 }
 0x353   : > { %v2925_v53 = vpop.eup %2924  ;;  %v1542_v43 = vmul.f32 1.442695, %v1522_v20 }
 0x354   : > { %1572 = vadd.xlane.f32.xlu1 %v2925_v53  ;;  %v1599_v54 = vpack.c.bf16 %v2925_v53, %v2923_v12 }
 0x355   : > { %2926 = vpow2.f32 %v1542_v43  ;;  %v2639_v43 = vld [vmem:[%s3595_s5 + $0x40] sm:$0xf] }
 0x356   : > { %1627 = vmatmul.bf16.gmra.mxu3 %v1599_v54  ;;  %v2751_v54 = vld [vmem:[%s3595_s5 + $0x44] sm:$0xf0] }
 0x358   : > { %v1497_v52 = vpop.xlane.xlu2 %1496 }
 0x359   : > { %v1523_v34 = vsub.f32 %v1458_v62, %v1497_v52  ;;  %v2750_v52 = vld [vmem:[%s3595_s5 + $0x44] sm:$0xf] }
 0x35b   : > { %v2927_v1 = vpop.eup %2926  ;;  %v1544_v58 = vmul.f32 1.442695, %v1523_v34 }
 0x35c   : > { %1574 = vadd.xlane.f32.xlu2 %v2927_v1 }
 0x35d   : > { %2928 = vpow2.f32 %v1544_v58  ;;  %v2641_v58 = vld [vmem:[%s3595_s5 + $0x48] sm:$0xf0] }
 0x360   : > { %v1499_v37 = vpop.xlane.xlu0 %1498 }
 0x361   : > { %v1524_v30 = vsub.f32 %v1461_v17, %v1499_v37  ;;  %v2655_v17 = vld [vmem:[%s3595_s5 + $0x60] sm:$0xf]  ;;  %v2631_v37 = vld [vmem:[%s3595_s5 + $0x30] sm:$0xf] }
 0x363   : > { %v2929_v16 = vpop.eup %2928  ;;  %v1546_v50 = vmul.f32 1.442695, %v1524_v30  ;;  %v2749_v30 = vld [vmem:[%s3595_s5 + $0x34] sm:$0xf0] }
 0x364   : > { %1576 = vadd.xlane.f32.xlu0 %v2929_v16  ;;  %v1600_v9 = vpack.c.bf16 %v2929_v16, %v2927_v1  ;;  %v2640_v1 = vor.u32 %v2751_v54, %v2639_v43  ;;  %v2644_v16 = vor.u32 %v2750_v52, %v2641_v58 }
 0x365   : > { %2930 = vpow2.f32 %v1546_v50  ;;  %v2633_v50 = vld [vmem:[%s3595_s5 + $0x38] sm:$0xf0] }
 0x366   : > { %1632 = vmatmul.bf16.gmra.mxu3 %v1600_v9 }
 0x368   : > { %v1501_v14 = vpop.xlane.xlu1 %1500 }
 0x369   : > { %v1525_v56 = vsub.f32 %v4006_v29, %v1501_v14  ;;  %v2755_v29 = vld [vmem:[%s3595_s5 + $0x64] sm:$0xf0] }
 0x36b   : > { %v2931_v31 = vpop.eup %2930  ;;  %v1548_v49 = vmul.f32 1.442695, %v1525_v56  ;;  %v2632_v56 = vor.u32 %v2749_v30, %v2631_v37 }
 0x36c   : > { %1578 = vadd.xlane.f32.xlu1 %v2931_v31 }
 0x36d   : > { %2932 = vpow2.f32 %v1548_v49 }
 0x370   : > { %v1503_v28 = vpop.xlane.xlu2 %1502 }
 0x371   : > { %v1526_v59 = vsub.f32 %v4009_v63, %v1503_v28  ;;  %v2754_v63 = vld [vmem:[%s3595_s5 + $0x64] sm:$0xf]  ;;  %v2623_v28 = vld [vmem:[%s3595_s5 + $0x20] sm:$0xf] }
 0x372   : > { %v2660_v38 = vor.u32 %v2754_v63, %v2657_v39 }
 0x373   : > { %v2933_v41 = vpop.eup %2932  ;;  %v1550_v25 = vmul.f32 1.442695, %v1526_v59  ;;  %v2747_v59 = vld [vmem:[%s3595_s5 + $0x24] sm:$0xf0] }
 0x374   : > { %1580 = vadd.xlane.f32.xlu2 %v2933_v41  ;;  %v1601_v60 = vpack.c.bf16 %v2933_v41, %v2931_v31  ;;  %1881 = vmatpush.bf16.msra.mxu1 %v2660_v38  ;;  %v2746_v41 = vld [vmem:[%s3595_s5 + $0x24] sm:$0xf] }
 0x375   : > { %2934 = vpow2.f32 %v1550_v25  ;;  %v2628_v26 = vor.u32 %v2746_v41, %v2625_v48 }
 0x376   : > { %1637 = vmatmul.bf16.gmra.mxu3 %v1601_v60  ;;  %v2624_v60 = vor.u32 %v2747_v59, %v2623_v28 }
 0x378   : > { %v1505_v42 = vpop.xlane.xlu0 %1504  ;;  %1882 = vmatpush.bf16.msra.mxu1 %v2652_v27 }
 0x379   : > { %v1527_v21 = vsub.f32 %v4012_v22, %v1505_v42  ;;  %v2656_v22 = vor.u32 %v2755_v29, %v2655_v17 }
 0x37b   : > { %v2935_v0 = vpop.eup %2934  ;;  %v1552_v40 = vmul.f32 1.442695, %v1527_v21  ;;  %1832 = vmatpush.bf16.msra.mxu0 %v2656_v22  ;;  %v2616_v21 = vor.u32 %v2745_v19, %v2615_v47 }
 0x37c   : > { %1582 = vadd.xlane.f32.xlu0 %v2935_v0  ;;  %1883 = vmatpush.bf16.msra.mxu1 %v2644_v16 }
 0x37d   : > { %2936 = vpow2.f32 %v1552_v40 }
 0x380   : > { %v1507_v45 = vpop.xlane.xlu1 %1506 }
 0x381   : > { %v1528_v55 = vsub.f32 %v4015_v8, %v1507_v45  ;;  %v2743_v45 = vld [vmem:[%s3595_s5 + $0x4] sm:$0xf0] }
 0x383   : > { %v2937_v11 = vpop.eup %2936  ;;  %v1554_v35 = vmul.f32 1.442695, %v1528_v55  ;;  %v2742_v55 = vld [vmem:[%s3595_s5 + $0x4] sm:$0xf] }
 0x384   : > { %1584 = vadd.xlane.f32.xlu1 %v2937_v11  ;;  %v1602_v62 = vpack.c.bf16 %v2937_v11, %v2935_v0  ;;  %v2617_v0 = vld [vmem:[%s3595_s5 + $0x18] sm:$0xf0] }
 0x385   : > { %2938 = vpow2.f32 %v1554_v35  ;;  %v2620_v40 = vor.u32 %v2744_v33, %v2617_v0  ;;  %v2609_v35 = vld [vmem:[%s3595_s5 + $0x8] sm:$0xf0] }
 0x386   : > { %1642 = vmatmul.bf16.gmra.mxu3 %v1602_v62  ;;  %v2612_v62 = vor.u32 %v2742_v55, %v2609_v35 }
 0x388   : > { %v1509_v61 = vpop.xlane.xlu2 %1508 }
 0x389   : > { %v1529_v57 = vsub.f32 %v4018_v6, %v1509_v61  ;;  %v2647_v6 = vld [vmem:[%s3595_s5 + $0x50] sm:$0xf] }
 0x38a   : > { %v2648_v5 = vor.u32 %v2753_v23, %v2647_v6 }
 0x38b   : > { %v2939_v8 = vpop.eup %2938  ;;  %v1556_v4 = vmul.f32 1.442695, %v1529_v57 }
 0x38c   : > { %1586 = vadd.xlane.f32.xlu2 %v2939_v8  ;;  %1833 = vmatpush.bf16.msra.mxu0 %v2648_v5 }
 0x38d   : > { %2940 = vpow2.f32 %v1556_v4 }
 0x390   : > { %v1511_v15 = vpop.xlane.xlu0 %1510  ;;  %1834 = vmatpush.bf16.msra.mxu0 %v2640_v1 }
 0x391   : > { %v1530_v46 = vsub.f32 %v4021_v18, %v1511_v15 }
 0x393   : > { %v2941_v32 = vpop.eup %2940  ;;  %v1558_v7 = vmul.f32 1.442695, %v1530_v46 }
 0x394   : > { %1588 = vadd.xlane.f32.xlu0 %v2941_v32  ;;  %v1603_v51 = vpack.c.bf16 %v2941_v32, %v2939_v8  ;;  %1835 = vmatpush.bf16.msra.mxu0 %v2632_v56 }
 0x395   : > { %2942 = vpow2.f32 %v1558_v7 }
 0x396   : > { %1647 = vmatmul.bf16.gmra.mxu3 %v1603_v51 }
 0x398   : > { %v1513_v12 = vpop.xlane.xlu1 %1512  ;;  %1836 = vmatpush.bf16.msra.mxu0 %v2624_v60 }
 0x399   : > { %v1531_v18 = vsub.f32 %v4024_v13, %v1513_v12  ;;  %v2748_v13 = vld [vmem:[%s3595_s5 + $0x34] sm:$0xf] }
 0x39b   : > { %v2943_v36 = vpop.eup %2942  ;;  %v1560_v20 = vmul.f32 1.442695, %v1531_v18 }
 0x39c   : > { %1590 = vadd.xlane.f32.xlu1 %v2943_v36  ;;  %1837 = vmatpush.bf16.msra.mxu0 %v2616_v21 }
 0x39d   : > { %2944 = vpow2.f32 %v1560_v20 }
 0x3a0   : > { %v1515_v53 = vpop.xlane.xlu2 %1514 }
 0x3a1   : > { %v1532_v34 = vsub.f32 %v4027_v2, %v1515_v53  ;;  %v2636_v2 = vor.u32 %v2748_v13, %v2633_v50 }
 0x3a3   : > { %v2945_v9 = vpop.eup %2944  ;;  %v1562_v14 = vmul.f32 1.442695, %v1532_v34  ;;  %1884 = vmatpush.bf16.msra.mxu1 %v2636_v2 }
 0x3a4   : > { %1592 = vadd.xlane.f32.xlu2 %v2945_v9  ;;  %v1604_v31 = vpack.c.bf16 %v2945_v9, %v2943_v36 }
 0x3a5   : > { %2946 = vpow2.f32 %v1562_v14 }
 0x3a6   : > { %1652 = vmatmul.bf16.gmra.mxu3 %v1604_v31 }
 0x3a7   : > { %1885 = vmatpush.bf16.msra.mxu1 %v2628_v26 }
 0x3a8   : > { %v1517_v49 = vpop.xlane.xlu0 %1516 }
 0x3a9   : > { %v1533_v25 = vsub.f32 %v4030_v3, %v1517_v49  ;;  %v2607_v3 = vld [vmem:[%s3595_s5] sm:$0xf]  ;;  %s4288_s5 = sld [smem:[#allocation23_spill]] }
 0x3aa   : > { %v2608_v11 = vor.u32 %v2743_v45, %v2607_v3 }
 0x3ab   : > { %v2947_v42 = vpop.eup %2946  ;;  %v1564_v44 = vmul.f32 1.442695, %v1533_v25  ;;  %1886 = vmatpush.bf16.msra.mxu1 %v2620_v40 }
 0x3ac   : > { %1594 = vadd.xlane.f32.xlu0 %v2947_v42  ;;  %1838 = vmatpush.bf16.msra.mxu0 %v2608_v11 }
 0x3ad   : > { %2948 = vpow2.f32 %v1564_v44 }
 0x3af   : > { %1887 = vmatpush.bf16.msra.mxu1 %v2612_v62  ;;  %v1567_v63 = vpop.xlane.xlu1 %1566  ;;  %p2669_p6 = scmp.ne.s32.totalorder %s4288_s5, 1 }
 0x3b0   : > { %2950 = vrcp.f32 %v1567_v63 }
 0x3b3   : > { %v2949_v17 = vpop.eup %2948 }
 0x3b4   : > { %1596 = vadd.xlane.f32.xlu1 %v2949_v17  ;;  %v1605_v29 = vpack.c.bf16 %v2949_v17, %v2947_v42 }
 0x3b6   : > { %1657 = vmatmul.bf16.gmra.mxu3 %v1605_v29  ;;  %v2951_v61 = vpop.eup %2950 }
 0x3b7   : > { %v1569_v22 = vpop.xlane.xlu2 %1568 }
 0x3b8   : > { %2952 = vrcp.f32 %v1569_v22 }
 0x3be   : > { %v2953_v38 = vpop.eup %2952 }
 0x3bf   : > { %v1571_v46 = vpop.xlane.xlu0 %1570 }
 0x3c0   : > { %2954 = vrcp.f32 %v1571_v46  ;;  %v1696_v46 = vld [vmem:[#allocation2] sm:$0xff] }
 0x3c6   : > { %v2955_v51 = vpop.eup %2954 }
 0x3c7   : > { %v1573_v32 = vpop.xlane.xlu1 %1572 }
 0x3c8   : > { %2956 = vrcp.f32 %v1573_v32 }
 0x3c9   : > { %v1623_v39 = vpop.f32.mrf.mxu3 }
 0x3ca   : > { %v1679_v8 = vmul.f32 %v2951_v61, %v1623_v39 }
 0x3ce   : > { %v2957_v6 = vpop.eup %2956 }
 0x3cf   : > { %v1575_v12 = vpop.xlane.xlu2 %1574 }
 0x3d0   : > { %2958 = vrcp.f32 %v1575_v12 }
 0x3d1   : > { %v1625_v57 = vpop.f32.mrf.mxu3 }
 0x3d2   : > { %v1680_v4 = vmul.f32 %v2953_v38, %v1625_v57 }
 0x3d4   : > { %v1727_v15 = vpack.c.bf16 %v1680_v4, %v1679_v8 }
 0x3d6   : > { %1839 = vmatmul.bf16.vlgmr.msra.gmra.mxu0 %v1727_v15  ;;  %1888 = vmatmul.bf16.vlgmr.msra.gmra.mxu1 %v1727_v15  ;;  %v2959_v36 = vpop.eup %2958  ;;  %v1695_v15 = vld [vmem:[#allocation2 + $0xb0] sm:$0xff] }
 0x3d7   : > { %v1577_v27 = vpop.xlane.xlu0 %1576 }
 0x3d8   : > { %2960 = vrcp.f32 %v1577_v27 }
 0x3d9   : > { %v1628_v7 = vpop.f32.mrf.mxu3 }
 0x3da   : > { %v1681_v10 = vmul.f32 %v2955_v51, %v1628_v7 }
 0x3de   : > { %v2961_v20 = vpop.eup %2960 }
 0x3df   : > { %v1579_v34 = vpop.xlane.xlu1 %1578 }
 0x3e0   : > { %2962 = vrcp.f32 %v1579_v34  ;;  %v1702_v34 = vld [vmem:[#allocation2 + $0x48] sm:$0xff] }
 0x3e1   : > { %v1630_v23 = vpop.f32.mrf.mxu3 }
 0x3e2   : > { %v1682_v5 = vmul.f32 %v2957_v6, %v1630_v23  ;;  %v1697_v23 = vld [vmem:[#allocation2 + $0xd8] sm:$0xff] }
 0x3e4   : > { %v1728_v24 = vpack.c.bf16 %v1682_v5, %v1681_v10  ;;  %v1698_v10 = vld [vmem:[#allocation2 + $0x18] sm:$0xff] }
 0x3e6   : > { %1844 = vmatmul.bf16.gmra.mxu0 %v1728_v24  ;;  %1893 = vmatmul.bf16.gmra.mxu1 %v1728_v24  ;;  %v2963_v37 = vpop.eup %2962 }
 0x3e7   : > { %v1581_v1 = vpop.xlane.xlu2 %1580 }
 0x3e8   : > { %2964 = vrcp.f32 %v1581_v1 }
 0x3e9   : > { %v1633_v18 = vpop.f32.mrf.mxu3 }
 0x3ea   : > { %v1683_v43 = vmul.f32 %v2959_v36, %v1633_v18  ;;  %v1699_v18 = vld [vmem:[#allocation2 + $0x50] sm:$0xff]  ;;  %v1700_v36 = vld [vmem:[#allocation2 + $0x68] sm:$0xff] }
 0x3ee   : > { %v2965_v30 = vpop.eup %2964 }
 0x3ef   : > { %v1583_v14 = vpop.xlane.xlu0 %1582 }
 0x3f0   : > { %2966 = vrcp.f32 %v1583_v14 }
 0x3f1   : > { %v1635_v53 = vpop.f32.mrf.mxu3 }
 0x3f2   : > { %v1684_v54 = vmul.f32 %v2961_v20, %v1635_v53 }
 0x3f4   : > { %v1729_v52 = vpack.c.bf16 %v1684_v54, %v1683_v43 }
 0x3f6   : > { %1849 = vmatmul.bf16.gmra.mxu0 %v1729_v52  ;;  %1898 = vmatmul.bf16.gmra.mxu1 %v1729_v52  ;;  %v2967_v2 = vpop.eup %2966  ;;  %v1701_v52 = vld [vmem:[#allocation2 + $0x30] sm:$0xff] }
 0x3f7   : > { %v1585_v56 = vpop.xlane.xlu1 %1584 }
 0x3f8   : > { %2968 = vrcp.f32 %v1585_v56 }
 0x3f9   : > { %v1638_v58 = vpop.f32.mrf.mxu3 }
 0x3fa   : > { %v1685_v13 = vmul.f32 %v2963_v37, %v1638_v58 }
 0x3fe   : > { %v2969_v49 = vpop.eup %2968 }
 0x3ff   : > { %v1587_v60 = vpop.xlane.xlu2 %1586 }
 0x400   : > { %2970 = vrcp.f32 %v1587_v60  ;;  %v1708_v60 = vld [vmem:[#allocation2 + $0xf0] sm:$0xff] }
 0x401   : > { %v1640_v16 = vpop.f32.mrf.mxu3 }
 0x402   : > { %v1686_v50 = vmul.f32 %v2965_v30, %v1640_v16  ;;  %v1703_v16 = vld [vmem:[#allocation2 + $0x80] sm:$0xff] }
 0x404   : > { %v1730_v9 = vpack.c.bf16 %v1686_v50, %v1685_v13  ;;  %v1704_v13 = vld [vmem:[#allocation2 + $0x88] sm:$0xff] }
 0x406   : > { %1854 = vmatmul.bf16.gmra.mxu0 %v1730_v9  ;;  %1903 = vmatmul.bf16.gmra.mxu1 %v1730_v9  ;;  %v2971_v47 = vpop.eup %2970 }
 0x407   : > { %v1589_v48 = vpop.xlane.xlu0 %1588 }
 0x408   : > { %2972 = vrcp.f32 %v1589_v48 }
 0x409   : > { %v1643_v31 = vpop.f32.mrf.mxu3 }
 0x40a   : > { %v1687_v59 = vmul.f32 %v2967_v2, %v1643_v31  ;;  %v1705_v31 = vld [vmem:[#allocation2 + $0xe8] sm:$0xff]  ;;  %v1706_v2 = vld [vmem:[#allocation2 + $0xb8] sm:$0xff] }
 0x40e   : > { %v2973_v19 = vpop.eup %2972 }
 0x40f   : > { %v1591_v0 = vpop.xlane.xlu1 %1590 }
 0x410   : > { %2974 = vrcp.f32 %v1591_v0 }
 0x411   : > { %v1645_v28 = vpop.f32.mrf.mxu3 }
 0x412   : > { %v1688_v41 = vmul.f32 %v2969_v49, %v1645_v28 }
 0x414   : > { %v1731_v25 = vpack.c.bf16 %v1688_v41, %v1687_v59 }
 0x416   : > { %1859 = vmatmul.bf16.gmra.mxu0 %v1731_v25  ;;  %1908 = vmatmul.bf16.gmra.mxu1 %v1731_v25  ;;  %v2975_v45 = vpop.eup %2974  ;;  %v1707_v25 = vld [vmem:[#allocation2 + $0x60] sm:$0xff] }
 0x417   : > { %v1593_v40 = vpop.xlane.xlu2 %1592 }
 0x418   : > { %2976 = vrcp.f32 %v1593_v40 }
 0x419   : > { %v1648_v26 = vpop.f32.mrf.mxu3 }
 0x41a   : > { %v1689_v42 = vmul.f32 %v2971_v47, %v1648_v26 }
 0x41e   : > { %v2977_v55 = vpop.eup %2976 }
 0x41f   : > { %v1595_v29 = vpop.xlane.xlu0 %1594 }
 0x420   : > { %2978 = vrcp.f32 %v1595_v29  ;;  %v1714_v29 = vld [vmem:[#allocation2 + $0xc8] sm:$0xff] }
 0x421   : > { %v1650_v33 = vpop.f32.mrf.mxu3 }
 0x422   : > { %v1690_v44 = vmul.f32 %v2973_v19, %v1650_v33  ;;  %v1709_v33 = vld [vmem:[#allocation2 + $0x8] sm:$0xff] }
 0x424   : > { %v1732_v21 = vpack.c.bf16 %v1690_v44, %v1689_v42  ;;  %v1710_v42 = vld [vmem:[#allocation2 + $0x78] sm:$0xff] }
 0x426   : > { %1864 = vmatmul.bf16.gmra.mxu0 %v1732_v21  ;;  %1913 = vmatmul.bf16.gmra.mxu1 %v1732_v21  ;;  %v2979_v39 = vpop.eup %2978 }
 0x427   : > { %v1597_v63 = vpop.xlane.xlu1 %1596 }
 0x428   : > { %2980 = vrcp.f32 %v1597_v63 }
 0x429   : > { %v1653_v3 = vpop.f32.mrf.mxu3 }
 0x42a   : > { %v1691_v35 = vmul.f32 %v2975_v45, %v1653_v3  ;;  %v1711_v3 = vld [vmem:[#allocation2 + $0x38] sm:$0xff] }
 0x42b   : > { %v1712_v45 = vld [vmem:[#allocation2 + $0x58] sm:$0xff] }
 0x42e   : > { %v2981_v61 = vpop.eup %2980 }
 0x431   : > { %v1655_v11 = vpop.f32.mrf.mxu3 }
 0x432   : > { %v1692_v62 = vmul.f32 %v2977_v55, %v1655_v11 }
 0x434   : > { %v1733_v17 = vpack.c.bf16 %v1692_v62, %v1691_v35 }
 0x436   : > { %1869 = vmatmul.bf16.gmra.mxu0 %v1733_v17  ;;  %1918 = vmatmul.bf16.gmra.mxu1 %v1733_v17  ;;  %v1713_v17 = vld [vmem:[#allocation2 + $0x40] sm:$0xff] }
 0x439   : > { %v1658_v22 = vpop.f32.mrf.mxu3 }
 0x43a   : > { %v1693_v57 = vmul.f32 %v2979_v39, %v1658_v22 }
 0x441   : > { %v1660_v38 = vpop.f32.mrf.mxu3 }
 0x442   : > { %v1694_v8 = vmul.f32 %v2981_v61, %v1660_v38  ;;  %v1715_v38 = vld [vmem:[#allocation2 + $0xe0] sm:$0xff] }
 0x444   : > { %v1734_v4 = vpack.c.bf16 %v1694_v8, %v1693_v57  ;;  %v1716_v57 = vld [vmem:[#allocation2 + $0x90] sm:$0xff] }
 0x446   : > { %1874 = vmatmul.bf16.gmra.mxu0 %v1734_v4  ;;  %1923 = vmatmul.bf16.gmra.mxu1 %v1734_v4 }
 0x453   : > { %v1840_v32 = vpop.f32.mrf.mxu0  ;;  %v1889_v7 = vpop.f32.mrf.mxu1 }
 0x454   : > { %v1929_v51 = vadd.f32 %v1840_v32, %v1695_v15  ;;  %v1930_v6 = vadd.f32 %v1889_v7, %v1696_v46  ;;  %v1717_v32 = vld [vmem:[#allocation2 + $0x70] sm:$0xff]  ;;  %v1718_v7 = vld [vmem:[#allocation2 + $0xc0] sm:$0xff] }
 0x456   : > { %1961 = vst [vmem:[#allocation2 + $0xb0] sm:$0xff] %v1929_v51 }
 0x457   : > { %1962 = vst [vmem:[#allocation2] sm:$0xff] %v1930_v6 }
 0x45b   : > { %v1842_v5 = vpop.f32.mrf.mxu0  ;;  %v1891_v24 = vpop.f32.mrf.mxu1 }
 0x45c   : > { %v1931_v12 = vadd.f32 %v1842_v5, %v1697_v23  ;;  %v1932_v27 = vadd.f32 %v1891_v24, %v1698_v10  ;;  %v1719_v5 = vld [vmem:[#allocation2 + $0xa8] sm:$0xff]  ;;  %v1720_v24 = vld [vmem:[#allocation2 + $0xd0] sm:$0xff] }
 0x45e   : > { %1963 = vst [vmem:[#allocation2 + $0xd8] sm:$0xff] %v1931_v12 }
 0x45f   : > { %1964 = vst [vmem:[#allocation2 + $0x18] sm:$0xff] %v1932_v27 }
 0x463   : > { %v1845_v20 = vpop.f32.mrf.mxu0  ;;  %v1894_v53 = vpop.f32.mrf.mxu1 }
 0x464   : > { %v1933_v43 = vadd.f32 %v1845_v20, %v1699_v18  ;;  %v1934_v54 = vadd.f32 %v1894_v53, %v1700_v36  ;;  %v1721_v20 = vld [vmem:[#allocation2 + $0x10] sm:$0xff]  ;;  %v1722_v53 = vld [vmem:[#allocation2 + $0x28] sm:$0xff] }
 0x466   : > { %1965 = vst [vmem:[#allocation2 + $0x50] sm:$0xff] %v1933_v43 }
 0x467   : > { %1966 = vst [vmem:[#allocation2 + $0x68] sm:$0xff] %v1934_v54 }
 0x46b   : > { %v1847_v1 = vpop.f32.mrf.mxu0  ;;  %v1896_v58 = vpop.f32.mrf.mxu1 }
 0x46c   : > { %v1935_v37 = vadd.f32 %v1847_v1, %v1701_v52  ;;  %v1936_v30 = vadd.f32 %v1896_v58, %v1702_v34  ;;  %v1723_v1 = vld [vmem:[#allocation2 + $0xa0] sm:$0xff]  ;;  %v1724_v58 = vld [vmem:[#allocation2 + $0xf8] sm:$0xff] }
 0x46e   : > { %1967 = vst [vmem:[#allocation2 + $0x30] sm:$0xff] %v1935_v37 }
 0x46f   : > { %1968 = vst [vmem:[#allocation2 + $0x48] sm:$0xff] %v1936_v30 }
 0x473   : > { %v1850_v50 = vpop.f32.mrf.mxu0  ;;  %v1899_v9 = vpop.f32.mrf.mxu1 }
 0x474   : > { %v1937_v14 = vadd.f32 %v1850_v50, %v1703_v16  ;;  %v1938_v56 = vadd.f32 %v1899_v9, %v1704_v13  ;;  %v1725_v50 = vld [vmem:[#allocation2 + $0x20] sm:$0xff]  ;;  %v1726_v9 = vld [vmem:[#allocation2 + $0x98] sm:$0xff] }
 0x476   : > { %1969 = vst [vmem:[#allocation2 + $0x80] sm:$0xff] %v1937_v14 }
 0x477   : > { %1970 = vst [vmem:[#allocation2 + $0x88] sm:$0xff] %v1938_v56 }
 0x47b   : > { %v1852_v49 = vpop.f32.mrf.mxu0  ;;  %v1901_v28 = vpop.f32.mrf.mxu1 }
 0x47c   : > { %v1939_v59 = vadd.f32 %v1852_v49, %v1705_v31  ;;  %v1940_v41 = vadd.f32 %v1901_v28, %v1706_v2 }
 0x47e   : > { %1971 = vst [vmem:[#allocation2 + $0xe8] sm:$0xff] %v1939_v59 }
 0x47f   : > { %1972 = vst [vmem:[#allocation2 + $0xb8] sm:$0xff] %v1940_v41 }
 0x483   : > { %v1855_v48 = vpop.f32.mrf.mxu0  ;;  %v1904_v26 = vpop.f32.mrf.mxu1 }
 0x484   : > { %v1941_v47 = vadd.f32 %v1855_v48, %v1707_v25  ;;  %v1942_v19 = vadd.f32 %v1904_v26, %v1708_v60 }
 0x486   : > { %1973 = vst [vmem:[#allocation2 + $0x60] sm:$0xff] %v1941_v47 }
 0x487   : > { %1974 = vst [vmem:[#allocation2 + $0xf0] sm:$0xff] %v1942_v19 }
 0x48b   : > { %v1857_v44 = vpop.f32.mrf.mxu0  ;;  %v1906_v21 = vpop.f32.mrf.mxu1 }
 0x48c   : > { %v1943_v0 = vadd.f32 %v1857_v44, %v1709_v33  ;;  %v1944_v40 = vadd.f32 %v1906_v21, %v1710_v42 }
 0x48e   : > { %1975 = vst [vmem:[#allocation2 + $0x8] sm:$0xff] %v1943_v0 }
 0x48f   : > { %1976 = vst [vmem:[#allocation2 + $0x78] sm:$0xff] %v1944_v40 }
 0x493   : > { %v1860_v55 = vpop.f32.mrf.mxu0  ;;  %v1909_v11 = vpop.f32.mrf.mxu1 }
 0x494   : > { %v1945_v35 = vadd.f32 %v1860_v55, %v1711_v3  ;;  %v1946_v62 = vadd.f32 %v1909_v11, %v1712_v45 }
 0x496   : > { %1977 = vst [vmem:[#allocation2 + $0x38] sm:$0xff] %v1945_v35 }
 0x497   : > { %1978 = vst [vmem:[#allocation2 + $0x58] sm:$0xff] %v1946_v62 }
 0x49b   : > { %v1862_v63 = vpop.f32.mrf.mxu0  ;;  %v1911_v22 = vpop.f32.mrf.mxu1 }
 0x49c   : > { %v1947_v39 = vadd.f32 %v1862_v63, %v1713_v17  ;;  %v1948_v61 = vadd.f32 %v1911_v22, %v1714_v29 }
 0x49e   : > { %1979 = vst [vmem:[#allocation2 + $0x40] sm:$0xff] %v1947_v39 }
 0x49f   : > { %1980 = vst [vmem:[#allocation2 + $0xc8] sm:$0xff] %v1948_v61 }
 0x4a3   : > { %v1865_v8 = vpop.f32.mrf.mxu0  ;;  %v1914_v4 = vpop.f32.mrf.mxu1 }
 0x4a4   : > { %v1949_v15 = vadd.f32 %v1865_v8, %v1715_v38  ;;  %v1950_v46 = vadd.f32 %v1914_v4, %v1716_v57 }
 0x4a6   : > { %1981 = vst [vmem:[#allocation2 + $0xe0] sm:$0xff] %v1949_v15 }
 0x4a7   : > { %1982 = vst [vmem:[#allocation2 + $0x90] sm:$0xff] %v1950_v46 }
 0x4ab   : > { %v1867_v51 = vpop.f32.mrf.mxu0  ;;  %v1916_v6 = vpop.f32.mrf.mxu1 }
 0x4ac   : > { %v1951_v23 = vadd.f32 %v1867_v51, %v1717_v32  ;;  %v1952_v10 = vadd.f32 %v1916_v6, %v1718_v7 }
 0x4ae   : > { %1983 = vst [vmem:[#allocation2 + $0x70] sm:$0xff] %v1951_v23 }
 0x4af   : > { %1984 = vst [vmem:[#allocation2 + $0xc0] sm:$0xff] %v1952_v10 }
 0x4b3   : > { %v1870_v12 = vpop.f32.mrf.mxu0  ;;  %v1919_v27 = vpop.f32.mrf.mxu1 }
 0x4b4   : > { %v1953_v18 = vadd.f32 %v1870_v12, %v1719_v5  ;;  %v1954_v36 = vadd.f32 %v1919_v27, %v1720_v24 }
 0x4b6   : > { %1985 = vst [vmem:[#allocation2 + $0xa8] sm:$0xff] %v1953_v18 }
 0x4b7   : > { %1986 = vst [vmem:[#allocation2 + $0xd0] sm:$0xff] %v1954_v36 }
 0x4bb   : > { %v1872_v43 = vpop.f32.mrf.mxu0  ;;  %v1921_v54 = vpop.f32.mrf.mxu1 }
 0x4bc   : > { %v1955_v52 = vadd.f32 %v1872_v43, %v1721_v20  ;;  %v1956_v34 = vadd.f32 %v1921_v54, %v1722_v53 }
 0x4be   : > { %1987 = vst [vmem:[#allocation2 + $0x10] sm:$0xff] %v1955_v52 }
 0x4bf   : > { %1988 = vst [vmem:[#allocation2 + $0x28] sm:$0xff] %v1956_v34 }
 0x4c3   : > { %v1875_v37 = vpop.f32.mrf.mxu0  ;;  %v1924_v30 = vpop.f32.mrf.mxu1 }
 0x4c4   : > { %v1957_v16 = vadd.f32 %v1875_v37, %v1723_v1  ;;  %v1958_v13 = vadd.f32 %v1924_v30, %v1724_v58 }
 0x4c6   : > { %1989 = vst [vmem:[#allocation2 + $0xa0] sm:$0xff] %v1957_v16 }
 0x4c7   : > { %1990 = vst [vmem:[#allocation2 + $0xf8] sm:$0xff] %v1958_v13 }
 0x4cb   : > { %v1877_v14 = vpop.f32.mrf.mxu0  ;;  %v1926_v56 = vpop.f32.mrf.mxu1  ;;  %1996 = sbr.rel (%p2669_p6) target bundleno = 1269 (0x4f5), region = 88 }
 0x4cc   : > { %v1959_v31 = vadd.f32 %v1877_v14, %v1725_v50  ;;  %v1960_v2 = vadd.f32 %v1926_v56, %v1726_v9 }
 0x4ce   : > { %1991 = vst [vmem:[#allocation2 + $0x20] sm:$0xff] %v1959_v31 }
 0x4cf   : > { %1992 = vst [vmem:[#allocation2 + $0x98] sm:$0xff] %v1960_v2 }
 0x4d0   : > { %v1997_v49 = vld [vmem:[#allocation2 + $0xb0] sm:$0xff]  ;;  %v2029_v28 = vld [vmem:[#allocation12] sm:$0x3]  ;;  %v1999_v60 = vld [vmem:[#allocation2 + $0xd8] sm:$0xff] }
 0x4d1   : > { %v1998_v59 = vld [vmem:[#allocation2] sm:$0xff]  ;;  %v4075_v41 = vperm.slane %v2029_v28, 0  ;;  %v4077_v25 = vperm.slane %v2029_v28, 1  ;;  %v2000_v48 = vld [vmem:[#allocation2 + $0x18] sm:$0xff]  ;;  %v2001_v26 = vld [vmem:[#allocation2 + $0x50] sm:$0xff] }
 0x4d2   : > { %v2002_v42 = vld [vmem:[#allocation2 + $0x68] sm:$0xff]  ;;  %v2003_v21 = vld [vmem:[#allocation2 + $0x30] sm:$0xff]  ;;  %v2005_v45 = vld [vmem:[#allocation2 + $0x80] sm:$0xff] }
 0x4d3   : > { %v2035_v47 = vadd.f32 %v4075_v41, %v1997_v49  ;;  %v2036_v19 = vadd.f32 %v4077_v25, %v1998_v59  ;;  %v2037_v33 = vadd.f32 %v4075_v41, %v1999_v60  ;;  %v2038_v44 = vadd.f32 %v4077_v25, %v2000_v48  ;;  %v2004_v40 = vld [vmem:[#allocation2 + $0x48] sm:$0xff]  ;;  %v2008_v29 = vld [vmem:[#allocation2 + $0xb8] sm:$0xff]  ;;  %v2009_v22 = vld [vmem:[#allocation2 + $0x60] sm:$0xff] }
 0x4d4   : > { %v2039_v0 = vadd.f32 %v4075_v41, %v2001_v26  ;;  %v2040_v3 = vadd.f32 %v4077_v25, %v2002_v42  ;;  %v2041_v55 = vadd.f32 %v4075_v41, %v2003_v21  ;;  %v2006_v11 = vld [vmem:[#allocation2 + $0x88] sm:$0xff]  ;;  %v2042_v35 = vadd.f32 %v4077_v25, %v2004_v40  ;;  %v2010_v61 = vld [vmem:[#allocation2 + $0xf0] sm:$0xff]  ;;  %v2012_v4 = vld [vmem:[#allocation2 + $0x78] sm:$0xff] }
 0x4d5   : > { %2067 = vst [vmem:[%s3618_s23] sm:$0xff] %v2035_v47  ;;  %v2007_v62 = vld [vmem:[#allocation2 + $0xe8] sm:$0xff]  ;;  %v2043_v17 = vadd.f32 %v4075_v41, %v2005_v45  ;;  %v2044_v63 = vadd.f32 %v4077_v25, %v2006_v11  ;;  %v2046_v38 = vadd.f32 %v4077_v25, %v2008_v29  ;;  %v2047_v8 = vadd.f32 %v4075_v41, %v2009_v22  ;;  %v2013_v46 = vld [vmem:[#allocation2 + $0x38] sm:$0xff]  ;;  %v2015_v6 = vld [vmem:[#allocation2 + $0x40] sm:$0xff] }
 0x4d6   : > { %2068 = vst [vmem:[%s3618_s23 + $0x8] sm:$0xff] %v2036_v19  ;;  %v2045_v39 = vadd.f32 %v4075_v41, %v2007_v62  ;;  %v2011_v57 = vld [vmem:[#allocation2 + $0x8] sm:$0xff]  ;;  %v2048_v15 = vadd.f32 %v4077_v25, %v2010_v61  ;;  %v2014_v7 = vld [vmem:[#allocation2 + $0x58] sm:$0xff]  ;;  %v2050_v51 = vadd.f32 %v4077_v25, %v2012_v4  ;;  %v2051_v23 = vadd.f32 %v4075_v41, %v2013_v46  ;;  %v2017_v24 = vld [vmem:[#allocation2 + $0xe0] sm:$0xff] }
 0x4d7   : > { %2069 = vst [vmem:[%s3618_s23 + $0x10] sm:$0xff] %v2037_v33  ;;  %v2049_v32 = vadd.f32 %v4075_v41, %v2011_v57  ;;  %v2016_v10 = vld [vmem:[#allocation2 + $0xc8] sm:$0xff]  ;;  %v2052_v5 = vadd.f32 %v4077_v25, %v2014_v7  ;;  %v2053_v12 = vadd.f32 %v4075_v41, %v2015_v6  ;;  %v2018_v27 = vld [vmem:[#allocation2 + $0x90] sm:$0xff]  ;;  %v2055_v20 = vadd.f32 %v4075_v41, %v2017_v24  ;;  %v2020_v53 = vld [vmem:[#allocation2 + $0xc0] sm:$0xff] }
 0x4d8   : > { %2070 = vst [vmem:[%s3618_s23 + $0x18] sm:$0xff] %v2038_v44  ;;  %v2054_v18 = vadd.f32 %v4077_v25, %v2016_v10  ;;  %v2019_v36 = vld [vmem:[#allocation2 + $0x70] sm:$0xff]  ;;  %v2056_v43 = vadd.f32 %v4077_v25, %v2018_v27  ;;  %v2021_v54 = vld [vmem:[#allocation2 + $0xa8] sm:$0xff]  ;;  %v2058_v1 = vadd.f32 %v4077_v25, %v2020_v53  ;;  %v2025_v13 = vld [vmem:[#allocation2 + $0xa0] sm:$0xff] }
 0x4d9   : > { %2071 = vst [vmem:[%s3618_s23 + $0x20] sm:$0xff] %v2039_v0  ;;  %v2057_v52 = vadd.f32 %v4075_v41, %v2019_v36  ;;  %v2022_v34 = vld [vmem:[#allocation2 + $0xd0] sm:$0xff]  ;;  %v2059_v37 = vadd.f32 %v4075_v41, %v2021_v54  ;;  %v2024_v30 = vld [vmem:[#allocation2 + $0x28] sm:$0xff]  ;;  %v2026_v9 = vld [vmem:[#allocation2 + $0xf8] sm:$0xff]  ;;  %v2063_v31 = vadd.f32 %v4075_v41, %v2025_v13 }
 0x4da   : > { %2072 = vst [vmem:[%s3618_s23 + $0x28] sm:$0xff] %v2040_v3  ;;  %v2023_v58 = vld [vmem:[#allocation2 + $0x10] sm:$0xff]  ;;  %v2060_v16 = vadd.f32 %v4077_v25, %v2022_v34  ;;  %v2062_v14 = vadd.f32 %v4077_v25, %v2024_v30  ;;  %v2027_v56 = vld [vmem:[#allocation2 + $0x20] sm:$0xff]  ;;  %v2028_v2 = vld [vmem:[#allocation2 + $0x98] sm:$0xff]  ;;  %v2064_v49 = vadd.f32 %v4077_v25, %v2026_v9 }
 0x4db   : > { %2073 = vst [vmem:[%s3618_s23 + $0x30] sm:$0xff] %v2041_v55  ;;  %v2061_v50 = vadd.f32 %v4075_v41, %v2023_v58  ;;  %v2065_v28 = vadd.f32 %v4075_v41, %v2027_v56  ;;  %v2066_v59 = vadd.f32 %v4077_v25, %v2028_v2 }
 0x4dc   : > { %2074 = vst [vmem:[%s3618_s23 + $0x38] sm:$0xff] %v2042_v35 }
 0x4dd   : > { %2075 = vst [vmem:[%s3618_s23 + $0x40] sm:$0xff] %v2043_v17 }
 0x4de   : > { %2076 = vst [vmem:[%s3618_s23 + $0x48] sm:$0xff] %v2044_v63 }
 0x4df   : > { %2077 = vst [vmem:[%s3618_s23 + $0x50] sm:$0xff] %v2045_v39 }
 0x4e0   : > { %2078 = vst [vmem:[%s3618_s23 + $0x58] sm:$0xff] %v2046_v38 }
 0x4e1   : > { %2079 = vst [vmem:[%s3618_s23 + $0x60] sm:$0xff] %v2047_v8 }
 0x4e2   : > { %2080 = vst [vmem:[%s3618_s23 + $0x68] sm:$0xff] %v2048_v15 }
 0x4e3   : > { %2081 = vst [vmem:[%s3618_s23 + $0x70] sm:$0xff] %v2049_v32 }
 0x4e4   : > { %2082 = vst [vmem:[%s3618_s23 + $0x78] sm:$0xff] %v2050_v51 }
 0x4e5   : > { %2083 = vst [vmem:[%s3618_s23 + $0x80] sm:$0xff] %v2051_v23 }
 0x4e6   : > { %2084 = vst [vmem:[%s3618_s23 + $0x88] sm:$0xff] %v2052_v5 }
 0x4e7   : > { %2085 = vst [vmem:[%s3618_s23 + $0x90] sm:$0xff] %v2053_v12 }
 0x4e8   : > { %2086 = vst [vmem:[%s3618_s23 + $0x98] sm:$0xff] %v2054_v18 }
 0x4e9   : > { %2087 = vst [vmem:[%s3618_s23 + $0xa0] sm:$0xff] %v2055_v20 }
 0x4ea   : > { %2088 = vst [vmem:[%s3618_s23 + $0xa8] sm:$0xff] %v2056_v43 }
 0x4eb   : > { %2089 = vst [vmem:[%s3618_s23 + $0xb0] sm:$0xff] %v2057_v52 }
 0x4ec   : > { %2090 = vst [vmem:[%s3618_s23 + $0xb8] sm:$0xff] %v2058_v1 }
 0x4ed   : > { %2091 = vst [vmem:[%s3618_s23 + $0xc0] sm:$0xff] %v2059_v37 }
 0x4ee   : > { %2092 = vst [vmem:[%s3618_s23 + $0xc8] sm:$0xff] %v2060_v16 }
 0x4ef   : > { %2093 = vst [vmem:[%s3618_s23 + $0xd0] sm:$0xff] %v2061_v50 }
 0x4f0   : > { %2094 = vst [vmem:[%s3618_s23 + $0xd8] sm:$0xff] %v2062_v14 }
 0x4f1   : > { %2095 = vst [vmem:[%s3618_s23 + $0xe0] sm:$0xff] %v2063_v31 }
 0x4f2   : > { %2096 = vst [vmem:[%s3618_s23 + $0xe8] sm:$0xff] %v2064_v49 }
 0x4f3   : > { %2097 = vst [vmem:[%s3618_s23 + $0xf0] sm:$0xff] %v2065_v28 }
 0x4f4   : > { %2098 = vst [vmem:[%s3618_s23 + $0xf8] sm:$0xff] %v2066_v59 }
 0x4f5 PF: > { %s4289_s10 = sld [smem:[#allocation24_spill]]  ;;  %s2112_s28 = sshll.u32 %s3618_s23, 4  ;;  %s2113_s28 = int_to_ptr.vmem [resolvable:$true] %s2112_s28 }
 0x4f6   : > { %s4290_s25 = sld [smem:[#allocation48_spill]]  ;;  %s2100_s0 = scalar_lea.sflag [#allocation5], %s3569_s9 }
 0x4fb   : > { %s2758_s26 = sshll.u32 %s4289_s10, 8 }
 0x4fc   : > { %s2111_s8 = scalar_lea.hbm %s4290_s25, %s2758_s26  ;;  %s3182_s24 = scalar_lea.hbm %s4290_s25, 512 }
 0x4fd   : > { %s2114_s18 = sshll.u32 %s2111_s8, 4  ;;  %s2115_s18 = int_to_ptr.hbm [resolvable:$true] %s2114_s18 }
 0x4fe   : > { %s3176_s20 = sshra.s32 %s2115_s18, 4  ;;  %s3177_s20 = int_to_ptr.hbm [resolvable:$true] %s3176_s20 }
 0x4ff   : > { %s3178_s2 = scalar_lea.hbm %s3177_s20, 256  ;;  %p3183_p12 = scmp.lt.s32.totalorder %s3177_s20, %s4290_s25 }
 0x500   : > { %p3179_p9 = scmp.ne.s32.totalorder %s3177_s20, %s3178_s2  ;;  %p3184_p1 = scmp.lt.s32.totalorder %s3182_s24, %s3178_s2 }
 0x502   : > { %p3180_p11 = pnand %p3179_p9, %p3527_p7  ;;  %p3185_p5 = por %p3184_p1, %p3183_p12 }
 0x504   : > { %p3181_p3 = pneg %p3180_p11 }
 0x506   : > { %p3186_p0 = pnand %p3185_p5, %p3181_p3 }
 0x508   : > { %3189 = shalt.err (!%p3186_p0)
}
 0x509   : > { %s3304_s9 = smov 256   ;;  %s3305_s23 = smov 16  }
 0x50a   : > { %2789 = dma.vmem_to_hbm [thread:$0]  (%p3527_p7), %s2113_s28, 4096, %s2115_s18, %s2100_s0, %s3304_s9, %s3304_s9, %s3305_s23  }
 0x50b PF: > { %s4291_s1 = sld [smem:[#allocation21_spill]]  ;;  %p2818_p8 = scmp.ge.s32.totalorder %s3296_s19, 2 }
 0x50d   : > { %p2812_p10 = pnand %p2818_p8, %p3481_p13 }
 0x50f   : > { %p2813_p2 = pneg %p2812_p10 }
 0x511   : > { %s2129_s12 = sand.u32 1, %s4291_s1  }
 0x512   : > { %s2130_s6 = scalar_lea.sflag [#allocation5], %s2129_s12 }
 0x513   : > { %3251 = dma.done.wait (%p2813_p2), %s2130_s6, 4096  }
 0x514   : > { %3253 = vsyncadd (%p2813_p2), %s2130_s6, 4294963200  ;;  %s32_s19 = sadd.s32 1, %s3296_s19   ;;  %s4293_s30 = sld [smem:[#allocation20_spill]] }
 0x515   : > { %p29_p4 = scmp.ge.s32.totalorder %s32_s19, 6   ;;  %s4294_s27 = sld [smem:[#allocation30_spill]] }
 0x516   : > { %s4295_s3 = sld [smem:[#allocation22_spill]]  ;;  %s4300_s10 = smov %s3264_s11 }
 0x517   : > { %s4296_s14 = sld [smem:[#allocation31_spill]]  ;;  %s4302_s12 = smov %s3272_s13 }
 0x518   : > { %s4297_s16 = sld [smem:[#allocation25_spill]]  ;;  %s4304_s15 = smov %s3288_s17 }
 0x519   : > { %s4298_s7 = sld [smem:[#allocation28_spill]] }
 0x51a   : > { %s4299_s18 = sld [smem:[#allocation29_spill]] }
 0x51b   : > { %s4301_s11 = smov %s4294_s27  ;;  %31 = sbr.rel (!%p29_p4) target bundleno = 24 (0x18), region = 170 }
 0x51c   : > { %s4303_s13 = smov %s4295_s3 }
 0x51f   : > { %s4305_s17 = smov %s4298_s7 }
 0x520   :  { %2136 = vsyncpa [#allocation4], 1 }
 0x521   :  { %2138 = vsyncpa [#allocation4 + $0x1], 1 }
 0x522   :  { %2139 = vsyncpa [#allocation7], 1 }
 0x523   :  { %2141 = vsyncpa [#allocation7 + $0x1], 1 }
 0x524   :  { %2142 = vsyncpa [#allocation10], 1 }
 0x525   :  { %2144 = vsyncpa [#allocation10 + $0x1], 1 }
 0x526   :  { %2145 = vsyncpa [#allocation13], 1 }
 0x527   :  { %2146 = vsyncpa [#allocation5], 1 }
 0x528   :  { %2148 = vsyncpa [#allocation5 + $0x1], 1 }

</bundles_post_ra>
